<compile_context>
chip_gen: v5e
topology: v5e:2x2
jax: 0.10.0
libtpu: 0.0.40
codegen_flags: <defaults>
</compile_context>

<pallas_src>
import functools

import jax
import jax.numpy as jnp
import numpy as np
from jax.experimental import pallas as pl
from jax.experimental.pallas import tpu as pltpu


# ---------------------------------------------------------------------------
# Fused Pallas kernel: upsample x2 + (conv3x3 + BN + LReLU) x 2, Nb images.
# ---------------------------------------------------------------------------
def _up_fused_kernel(ho, x_ref, ry_ref, t1_ref, b1_ref, t2_ref, b2_ref, o_ref):
    # x_ref : (Nb*H,  W*Cin)         bf16 input rows (Nb images stacked)
    # ry_ref: (3, Nb*Ho, Nb*H)       bf16 block-diag (conv1 kh-shift @ row-interp)
    # t1_ref: (3, W*Cin, Wo*Cout)    bf16 conv1 Toeplitz (kw taps + W pad + col
    #                                interp + BN scale folded in)
    # b1_ref: (1, Wo*Cout)           f32 conv1 folded bias (conv bias + BN)
    # t2_ref: (3, Wo*Cout, Wo*Cout)  bf16 conv2 Toeplitz (BN scale folded in)
    # b2_ref: (1, Wo*Cout)           f32 conv2 folded bias
    # o_ref : (Nb*Ho, Wo*Cout)       f32 lane-dense output slab
    f32, bf16 = jnp.float32, jnp.bfloat16
    m = o_ref.shape[0]                          # Nb * Ho rows in this block

    x = x_ref[...]                              # bf16

    # ---- conv1 (upsample + kh shifts live in ry taps; everything else in t1)
    u = jnp.dot(ry_ref[0], x, preferred_element_type=f32).astype(bf16)
    acc = jnp.dot(u, t1_ref[0], preferred_element_type=f32)
    u = jnp.dot(ry_ref[1], x, preferred_element_type=f32).astype(bf16)
    acc = acc + jnp.dot(u, t1_ref[1], preferred_element_type=f32)
    u = jnp.dot(ry_ref[2], x, preferred_element_type=f32).astype(bf16)
    acc = acc + jnp.dot(u, t1_ref[2], preferred_element_type=f32)
    h1 = acc + b1_ref[...]
    h1 = jnp.where(h1 > 0, h1, 0.2 * h1)        # LeakyReLU(0.2), f32

    # ---- conv2 (kh row shifts via XLU roll + per-image boundary zero mask) --
    row = jax.lax.broadcasted_iota(jnp.int32, (m, 1), 0)
    acc = jnp.dot(h1.astype(bf16), t2_ref[1], preferred_element_type=f32)
    h_dn = jnp.where(row % ho == 0, 0.0,
                     pltpu.roll(h1, shift=1, axis=0)).astype(bf16)       # row h-1
    acc = acc + jnp.dot(h_dn, t2_ref[0], preferred_element_type=f32)
    h_up = jnp.where(row % ho == ho - 1, 0.0,
                     pltpu.roll(h1, shift=m - 1, axis=0)).astype(bf16)   # row h+1
    acc = acc + jnp.dot(h_up, t2_ref[2], preferred_element_type=f32)
    h2 = acc + b2_ref[...]
    o_ref[...] = jnp.where(h2 > 0, h2, 0.2 * h2).astype(o_ref.dtype)


# ---------------------------------------------------------------------------
# Wrapper-side parameter preprocessing (done once, plain JAX, f32)
# ---------------------------------------------------------------------------
def _interp_matrix(n_in, n_out):
    """Bilinear interpolation matrix (n_out, n_in), align_corners=True."""
    pos = jnp.arange(n_out, dtype=jnp.float32) * (n_in - 1) / (n_out - 1)
    i0 = jnp.floor(pos).astype(jnp.int32)
    i1 = jnp.minimum(i0 + 1, n_in - 1)
    frac = pos - i0.astype(jnp.float32)
    return (jax.nn.one_hot(i0, n_in, dtype=jnp.float32) * (1.0 - frac)[:, None]
            + jax.nn.one_hot(i1, n_in, dtype=jnp.float32) * frac[:, None])


def _toeplitz_weights(w, Wn):
    """Fold the 3 kw taps (+ W zero padding) of a 3x3 HWIO conv weight into
    per-kh Toeplitz matrices: (3, Wn*Cin, Wn*Cout).  Row index = input column
    (contracted), column index = output column."""
    _, _, cin, cout = w.shape
    win = jnp.arange(Wn)[:, None]                      # input column
    wout = jnp.arange(Wn)[None, :]                     # output column
    kw = win - wout + 1                                # kw tap index
    valid = ((kw >= 0) & (kw <= 2)).astype(w.dtype)
    kw_c = jnp.clip(kw, 0, 2)
    t = w[:, kw_c, :, :]                               # (3, Wn, Wn, Cin, Cout)
    t = t * valid[None, :, :, None, None]
    t = jnp.transpose(t, (0, 1, 3, 2, 4))              # (3, Wn_in, Cin, Wn_out, Cout)
    return t.reshape(3, Wn * cin, Wn * cout)


# ---------------------------------------------------------------------------
# Parameter construction (deterministic, synthetic) + BN folding (eval mode)
# ---------------------------------------------------------------------------
def make_params(key, in_channels, out_channels):
    def conv_block(k, cin, cout):
        k1, k2, k3, k4, k5, k6 = jax.random.split(k, 6)
        w = jax.random.normal(k1, (3, 3, cin, cout), jnp.float32) * 0.1
        b = jax.random.normal(k2, (cout,), jnp.float32) * 0.1
        gamma = 1.0 + 0.1 * jax.random.normal(k3, (cout,), jnp.float32)
        beta = 0.1 * jax.random.normal(k4, (cout,), jnp.float32)
        mean = 0.1 * jax.random.normal(k5, (cout,), jnp.float32)
        var = jax.random.uniform(k6, (cout,), jnp.float32, 0.5, 1.5)
        eps = 1e-5
        scale = gamma / jnp.sqrt(var + eps)
        bias = (b - mean) * scale + beta
        return w, scale, bias

    ka, kb = jax.random.split(key)
    return conv_block(ka, in_channels, out_channels), \
           conv_block(kb, out_channels, out_channels)


# ---------------------------------------------------------------------------
# Full Up.forward (one fused pallas_call)
# ---------------------------------------------------------------------------
def up_forward(x_nchw, params, images_per_block=None):
    (w1, s1, b1), (w2, s2, b2) = params
    N, Cin, H, W = x_nchw.shape
    Cout = w1.shape[-1]
    Ho, Wo = 2 * H, 2 * W
    f32, bf16 = jnp.float32, jnp.bfloat16

    # Grid decomposition: keep >=2 "parallel" grid steps when the batch allows
    # it (both v7x TensorCores get work), while packing N/2 images per block so
    # the conv matmuls see M = Nb*Ho rows (fatter MXU use on single-TC v5e/v6e,
    # fewer per-step overheads, grid-invariant weights streamed once).
    if images_per_block is None:
        images_per_block = N // 2 if (N % 2 == 0 and N >= 2) else N
    nb = images_per_block
    assert N % nb == 0
    num_blocks = N // nb
    mi, mo = nb * H, nb * Ho

    # Activations: NCHW -> lane-dense (N*H, W*Cin) slab, bf16 MXU operands.
    x = jnp.transpose(x_nchw, (0, 2, 3, 1)).reshape(N * H, W * Cin).astype(bf16)

    # Per-kh row operators: (conv1 kh shift) @ (bilinear row interp),
    # block-diagonal over the nb images of one block.
    ry = _interp_matrix(H, Ho)                                      # (Ho, H)
    ry_taps = jnp.stack([jnp.eye(Ho, k=-1, dtype=f32) @ ry,         # rows h-1 (top -> 0)
                         ry,                                        # rows h
                         jnp.eye(Ho, k=1, dtype=f32) @ ry])         # rows h+1 (bottom -> 0)
    eye_nb = jnp.eye(nb, dtype=f32)
    ry_taps = jnp.einsum('ab,tij->taibj', eye_nb, ry_taps)
    ry_taps = ry_taps.reshape(3, mo, mi).astype(bf16)               # (3, Nb*Ho, Nb*H)

    # Conv weights: Toeplitz over W (kw taps + W pad folded), BN scale folded
    # into the weights, column interpolation folded into conv1's weights.
    rx = _interp_matrix(W, Wo)                                      # (Wo, W)
    cx = jnp.einsum('vw,ij->wivj', rx,
                    jnp.eye(Cin, dtype=f32)).reshape(W * Cin, Wo * Cin)
    t1 = _toeplitz_weights(w1 * s1, Wo)                             # (3, Wo*Cin, Wo*Cout)
    t1 = jnp.einsum('ki,tio->tko', cx, t1).astype(bf16)             # (3, W*Cin,  Wo*Cout)
    t2 = _toeplitz_weights(w2 * s2, Wo).astype(bf16)                # (3, Wo*Cout, Wo*Cout)
    bias1 = jnp.tile(b1, Wo).reshape(1, Wo * Cout)                  # f32, lane layout
    bias2 = jnp.tile(b2, Wo).reshape(1, Wo * Cout)

    kernel = functools.partial(_up_fused_kernel, Ho)
    out = pl.pallas_call(
        kernel,
        out_shape=jax.ShapeDtypeStruct((N * Ho, Wo * Cout), f32),
        grid=(num_blocks,),
        in_specs=[
            pl.BlockSpec((mi, W * Cin), lambda n: (n, 0)),
            pl.BlockSpec((3, mo, mi), lambda n: (0, 0, 0)),
            pl.BlockSpec((3, W * Cin, Wo * Cout), lambda n: (0, 0, 0)),
            pl.BlockSpec((1, Wo * Cout), lambda n: (0, 0)),
            pl.BlockSpec((3, Wo * Cout, Wo * Cout), lambda n: (0, 0, 0)),
            pl.BlockSpec((1, Wo * Cout), lambda n: (0, 0)),
        ],
        out_specs=pl.BlockSpec((mo, Wo * Cout), lambda n: (n, 0)),
        compiler_params=pltpu.CompilerParams(
            dimension_semantics=("parallel",)),
    )(x, ry_taps, t1, bias1, t2, bias2)

    # (N*Ho, Wo*Cout) slab -> NCHW
    out = out.reshape(N, Ho, Wo, Cout)
    return jnp.transpose(out, (0, 3, 1, 2)).astype(x_nchw.dtype)


# ---------------------------------------------------------------------------
# Plain-JAX reference (independent formulation, for a numerical sanity check)
# ---------------------------------------------------------------------------
def upsample_bilinear_x2_align_corners(x):
    N, H, W, C = x.shape
    Ho, Wo = 2 * H, 2 * W

    ys = jnp.arange(Ho, dtype=jnp.float32) * (H - 1) / (Ho - 1)
    xs = jnp.arange(Wo, dtype=jnp.float32) * (W - 1) / (Wo - 1)

    y0 = jnp.floor(ys).astype(jnp.int32)
    y1 = jnp.minimum(y0 + 1, H - 1)
    wy = (ys - y0.astype(jnp.float32))[None, :, None, None]

    x0 = jnp.floor(xs).astype(jnp.int32)
    x1 = jnp.minimum(x0 + 1, W - 1)
    wx = (xs - x0.astype(jnp.float32))[None, None, :, None]

    rows = x[:, y0, :, :] * (1.0 - wy) + x[:, y1, :, :] * wy
    return rows[:, :, x0, :] * (1.0 - wx) + rows[:, :, x1, :] * wx


def _ref_conv_block(x, w, scale, bias):
    y = jax.lax.conv_general_dilated(
        x, w, window_strides=(1, 1), padding="SAME",
        dimension_numbers=("NHWC", "HWIO", "NHWC"))
    y = y * scale + bias
    return jnp.where(y > 0, y, 0.2 * y)


def up_forward_ref(x_nchw, params):
    (w1, s1, b1), (w2, s2, b2) = params
    x = jnp.transpose(x_nchw, (0, 2, 3, 1))
    x = upsample_bilinear_x2_align_corners(x)
    x = _ref_conv_block(x, w1, s1, b1)
    x = _ref_conv_block(x, w2, s2, b2)
    return jnp.transpose(x, (0, 3, 1, 2))


if __name__ == "__main__":
    key = jax.random.PRNGKey(0)
    k_x, k_p = jax.random.split(key)

    N, Cin, Cout, H, W = 2, 4, 8, 16, 16
    x = jax.random.normal(k_x, (N, Cin, H, W), jnp.float32)
    params = make_params(k_p, Cin, Cout)

    fwd = jax.jit(up_forward)
    out = jax.block_until_ready(fwd(x, params))

    ref = jax.block_until_ready(jax.jit(up_forward_ref)(x, params))
    assert out.shape == (N, Cout, 2 * H, 2 * W), out.shape
    # bf16 MXU operands (f32 accumulation) vs. f32 reference: loosened tolerance.
    np.testing.assert_allclose(np.asarray(out), np.asarray(ref),
                               rtol=3e-2, atol=3e-2)

    print("KERNEL_OK")
</pallas_src>

<mosaic_0001>
module attributes {stable_mosaic.version = 11 : i64} {
  func.func @_up_fused_kernel(%arg0: i32, %arg1: memref<16x64xbf16, #tpu.memory_space<vmem>>, %arg2: memref<3x32x16xbf16, #tpu.memory_space<vmem>>, %arg3: memref<3x64x256xbf16, #tpu.memory_space<vmem>>, %arg4: memref<1x256xf32, #tpu.memory_space<vmem>>, %arg5: memref<3x256x256xbf16, #tpu.memory_space<vmem>>, %arg6: memref<1x256xf32, #tpu.memory_space<vmem>>, %arg7: memref<32x256xf32, #tpu.memory_space<vmem>>) attributes {dimension_semantics = [#tpu.dimension_semantics<parallel>], iteration_bounds = array<i64: 2>, scalar_prefetch = 0 : i64, scratch_operands = 0 : i64, tpu.core_type = #tpu.core_type<tc>, window_params = [{transform_indices = @transform_0, window_bounds = array<i64: 16, 64>}, {pipeline_mode = #tpu.pipeline_mode<synchronous>, transform_indices = @transform_1, window_bounds = array<i64: 3, 32, 16>}, {pipeline_mode = #tpu.pipeline_mode<synchronous>, transform_indices = @transform_2, window_bounds = array<i64: 3, 64, 256>}, {pipeline_mode = #tpu.pipeline_mode<synchronous>, transform_indices = @transform_3, window_bounds = array<i64: 1, 256>}, {pipeline_mode = #tpu.pipeline_mode<synchronous>, transform_indices = @transform_4, window_bounds = array<i64: 3, 256, 256>}, {pipeline_mode = #tpu.pipeline_mode<synchronous>, transform_indices = @transform_5, window_bounds = array<i64: 1, 256>}, {transform_indices = @transform_6, window_bounds = array<i64: 32, 256>}]} {
    %c0 = arith.constant 0 : index
    %c0_0 = arith.constant 0 : index
    %0 = vector.load %arg1[%c0, %c0_0] : memref<16x64xbf16, #tpu.memory_space<vmem>>, vector<16x64xbf16>
    %c0_1 = arith.constant 0 : index
    %c0_2 = arith.constant 0 : index
    %c0_3 = arith.constant 0 : index
    %1 = vector.load %arg2[%c0_1, %c0_2, %c0_3] : memref<3x32x16xbf16, #tpu.memory_space<vmem>>, vector<1x32x16xbf16>
    %2 = vector.shape_cast %1 : vector<1x32x16xbf16> to vector<32x16xbf16>
    %cst = arith.constant dense<0.000000e+00> : vector<32x64xf32>
    %3 = tpu.matmul %2, %0, %cst {dimension_numbers = #tpu.dot_dimension_numbers<[1], [0], [0], [1], [0, 0, 1, 1], [], []>} : vector<32x16xbf16>, vector<16x64xbf16>, vector<32x64xf32> -> vector<32x64xf32>
    %4 = arith.truncf %3 : vector<32x64xf32> to vector<32x64xbf16>
    %c0_4 = arith.constant 0 : index
    %c0_5 = arith.constant 0 : index
    %c0_6 = arith.constant 0 : index
    %5 = vector.load %arg3[%c0_4, %c0_5, %c0_6] : memref<3x64x256xbf16, #tpu.memory_space<vmem>>, vector<1x64x256xbf16>
    %6 = vector.shape_cast %5 : vector<1x64x256xbf16> to vector<64x256xbf16>
    %cst_7 = arith.constant dense<0.000000e+00> : vector<32x256xf32>
    %7 = tpu.matmul %4, %6, %cst_7 {dimension_numbers = #tpu.dot_dimension_numbers<[1], [0], [0], [1], [0, 0, 1, 1], [], []>} : vector<32x64xbf16>, vector<64x256xbf16>, vector<32x256xf32> -> vector<32x256xf32>
    %c1 = arith.constant 1 : index
    %c0_8 = arith.constant 0 : index
    %c0_9 = arith.constant 0 : index
    %8 = vector.load %arg2[%c1, %c0_8, %c0_9] : memref<3x32x16xbf16, #tpu.memory_space<vmem>>, vector<1x32x16xbf16>
    %9 = vector.shape_cast %8 : vector<1x32x16xbf16> to vector<32x16xbf16>
    %cst_10 = arith.constant dense<0.000000e+00> : vector<32x64xf32>
    %10 = tpu.matmul %9, %0, %cst_10 {dimension_numbers = #tpu.dot_dimension_numbers<[1], [0], [0], [1], [0, 0, 1, 1], [], []>} : vector<32x16xbf16>, vector<16x64xbf16>, vector<32x64xf32> -> vector<32x64xf32>
    %11 = arith.truncf %10 : vector<32x64xf32> to vector<32x64xbf16>
    %c1_11 = arith.constant 1 : index
    %c0_12 = arith.constant 0 : index
    %c0_13 = arith.constant 0 : index
    %12 = vector.load %arg3[%c1_11, %c0_12, %c0_13] : memref<3x64x256xbf16, #tpu.memory_space<vmem>>, vector<1x64x256xbf16>
    %13 = vector.shape_cast %12 : vector<1x64x256xbf16> to vector<64x256xbf16>
    %cst_14 = arith.constant dense<0.000000e+00> : vector<32x256xf32>
    %14 = tpu.matmul %11, %13, %cst_14 {dimension_numbers = #tpu.dot_dimension_numbers<[1], [0], [0], [1], [0, 0, 1, 1], [], []>} : vector<32x64xbf16>, vector<64x256xbf16>, vector<32x256xf32> -> vector<32x256xf32>
    %15 = arith.addf %7, %14 : vector<32x256xf32>
    %c2 = arith.constant 2 : index
    %c0_15 = arith.constant 0 : index
    %c0_16 = arith.constant 0 : index
    %16 = vector.load %arg2[%c2, %c0_15, %c0_16] : memref<3x32x16xbf16, #tpu.memory_space<vmem>>, vector<1x32x16xbf16>
    %17 = vector.shape_cast %16 : vector<1x32x16xbf16> to vector<32x16xbf16>
    %cst_17 = arith.constant dense<0.000000e+00> : vector<32x64xf32>
    %18 = tpu.matmul %17, %0, %cst_17 {dimension_numbers = #tpu.dot_dimension_numbers<[1], [0], [0], [1], [0, 0, 1, 1], [], []>} : vector<32x16xbf16>, vector<16x64xbf16>, vector<32x64xf32> -> vector<32x64xf32>
    %19 = arith.truncf %18 : vector<32x64xf32> to vector<32x64xbf16>
    %c2_18 = arith.constant 2 : index
    %c0_19 = arith.constant 0 : index
    %c0_20 = arith.constant 0 : index
    %20 = vector.load %arg3[%c2_18, %c0_19, %c0_20] : memref<3x64x256xbf16, #tpu.memory_space<vmem>>, vector<1x64x256xbf16>
    %21 = vector.shape_cast %20 : vector<1x64x256xbf16> to vector<64x256xbf16>
    %cst_21 = arith.constant dense<0.000000e+00> : vector<32x256xf32>
    %22 = tpu.matmul %19, %21, %cst_21 {dimension_numbers = #tpu.dot_dimension_numbers<[1], [0], [0], [1], [0, 0, 1, 1], [], []>} : vector<32x64xbf16>, vector<64x256xbf16>, vector<32x256xf32> -> vector<32x256xf32>
    %23 = arith.addf %15, %22 : vector<32x256xf32>
    %c0_22 = arith.constant 0 : index
    %c0_23 = arith.constant 0 : index
    %24 = vector.load %arg4[%c0_22, %c0_23] : memref<1x256xf32, #tpu.memory_space<vmem>>, vector<1x256xf32>
    %25 = vector.broadcast %24 : vector<1x256xf32> to vector<32x256xf32>
    %26 = arith.addf %23, %25 : vector<32x256xf32>
    %cst_24 = arith.constant 0.000000e+00 : f32
    %27 = vector.broadcast %cst_24 : f32 to vector<32x256xf32>
    %28 = arith.cmpf ogt, %26, %27 : vector<32x256xf32>
    %cst_25 = arith.constant 2.000000e-01 : f32
    %29 = vector.broadcast %cst_25 : f32 to vector<32x256xf32>
    %30 = arith.mulf %29, %26 : vector<32x256xf32>
    %31 = arith.select %28, %26, %30 : vector<32x256xi1>, vector<32x256xf32>
    %32 = tpu.iota {dimensions = array<i32: 0>} : vector<32x1xi32>
    %33 = arith.truncf %31 : vector<32x256xf32> to vector<32x256xbf16>
    %c1_26 = arith.constant 1 : index
    %c0_27 = arith.constant 0 : index
    %c0_28 = arith.constant 0 : index
    %34 = vector.load %arg5[%c1_26, %c0_27, %c0_28] : memref<3x256x256xbf16, #tpu.memory_space<vmem>>, vector<1x256x256xbf16>
    %35 = vector.shape_cast %34 : vector<1x256x256xbf16> to vector<256x256xbf16>
    %cst_29 = arith.constant dense<0.000000e+00> : vector<32x256xf32>
    %36 = tpu.matmul %33, %35, %cst_29 {dimension_numbers = #tpu.dot_dimension_numbers<[1], [0], [0], [1], [0, 0, 1, 1], [], []>} : vector<32x256xbf16>, vector<256x256xbf16>, vector<32x256xf32> -> vector<32x256xf32>
    %c32_i32 = arith.constant 32 : i32
    %c0_i32 = arith.constant 0 : i32
    %37 = arith.cmpi eq, %c32_i32, %c0_i32 : i32
    %c1_i32 = arith.constant 1 : i32
    %38 = arith.select %37, %c1_i32, %c32_i32 : i32
    %39 = vector.broadcast %38 : i32 to vector<32x1xi32>
    %40 = arith.remsi %32, %39 : vector<32x1xi32>
    %c0_i32_30 = arith.constant 0 : i32
    %41 = vector.broadcast %c0_i32_30 : i32 to vector<32x1xi32>
    %42 = arith.cmpi ne, %40, %41 : vector<32x1xi32>
    %c0_i32_31 = arith.constant 0 : i32
    %43 = vector.broadcast %c0_i32_31 : i32 to vector<32x1xi32>
    %44 = arith.cmpi slt, %40, %43 : vector<32x1xi32>
    %c0_i32_32 = arith.constant 0 : i32
    %45 = arith.cmpi slt, %38, %c0_i32_32 : i32
    %46 = vector.broadcast %45 : i1 to vector<32x1xi1>
    %47 = vector.broadcast %46 : vector<32x1xi1> to vector<32x1xi1>
    %48 = arith.xori %44, %47 : vector<32x1xi1>
    %49 = arith.andi %48, %42 : vector<32x1xi1>
    %50 = vector.broadcast %38 : i32 to vector<32x1xi32>
    %51 = arith.addi %40, %50 : vector<32x1xi32>
    %52 = arith.select %49, %51, %40 : vector<32x1xi1>, vector<32x1xi32>
    %c0_i32_33 = arith.constant 0 : i32
    %53 = vector.broadcast %c0_i32_33 : i32 to vector<32x1xi32>
    %54 = arith.cmpi eq, %52, %53 : vector<32x1xi32>
    %c1_i32_34 = arith.constant 1 : i32
    %55 = tpu.dynamic_rotate %31 by %c1_i32_34 dim 0 : vector<32x256xf32>, i32 -> vector<32x256xf32>
    %cst_35 = arith.constant 0.000000e+00 : f32
    %56 = vector.shape_cast %54 : vector<32x1xi1> to vector<32x1xi1>
    %57 = vector.broadcast %56 : vector<32x1xi1> to vector<32x256xi1>
    %58 = vector.broadcast %cst_35 : f32 to vector<32x256xf32>
    %59 = arith.select %57, %58, %55 : vector<32x256xi1>, vector<32x256xf32>
    %60 = arith.truncf %59 : vector<32x256xf32> to vector<32x256xbf16>
    %c0_36 = arith.constant 0 : index
    %c0_37 = arith.constant 0 : index
    %c0_38 = arith.constant 0 : index
    %61 = vector.load %arg5[%c0_36, %c0_37, %c0_38] : memref<3x256x256xbf16, #tpu.memory_space<vmem>>, vector<1x256x256xbf16>
    %62 = vector.shape_cast %61 : vector<1x256x256xbf16> to vector<256x256xbf16>
    %cst_39 = arith.constant dense<0.000000e+00> : vector<32x256xf32>
    %63 = tpu.matmul %60, %62, %cst_39 {dimension_numbers = #tpu.dot_dimension_numbers<[1], [0], [0], [1], [0, 0, 1, 1], [], []>} : vector<32x256xbf16>, vector<256x256xbf16>, vector<32x256xf32> -> vector<32x256xf32>
    %64 = arith.addf %36, %63 : vector<32x256xf32>
    %c32_i32_40 = arith.constant 32 : i32
    %c0_i32_41 = arith.constant 0 : i32
    %65 = arith.cmpi eq, %c32_i32_40, %c0_i32_41 : i32
    %c1_i32_42 = arith.constant 1 : i32
    %66 = arith.select %65, %c1_i32_42, %c32_i32_40 : i32
    %67 = vector.broadcast %66 : i32 to vector<32x1xi32>
    %68 = arith.remsi %32, %67 : vector<32x1xi32>
    %c0_i32_43 = arith.constant 0 : i32
    %69 = vector.broadcast %c0_i32_43 : i32 to vector<32x1xi32>
    %70 = arith.cmpi ne, %68, %69 : vector<32x1xi32>
    %c0_i32_44 = arith.constant 0 : i32
    %71 = vector.broadcast %c0_i32_44 : i32 to vector<32x1xi32>
    %72 = arith.cmpi slt, %68, %71 : vector<32x1xi32>
    %c0_i32_45 = arith.constant 0 : i32
    %73 = arith.cmpi slt, %66, %c0_i32_45 : i32
    %74 = vector.broadcast %73 : i1 to vector<32x1xi1>
    %75 = vector.broadcast %74 : vector<32x1xi1> to vector<32x1xi1>
    %76 = arith.xori %72, %75 : vector<32x1xi1>
    %77 = arith.andi %76, %70 : vector<32x1xi1>
    %78 = vector.broadcast %66 : i32 to vector<32x1xi32>
    %79 = arith.addi %68, %78 : vector<32x1xi32>
    %80 = arith.select %77, %79, %68 : vector<32x1xi1>, vector<32x1xi32>
    %c31_i32 = arith.constant 31 : i32
    %81 = vector.broadcast %c31_i32 : i32 to vector<32x1xi32>
    %82 = arith.cmpi eq, %80, %81 : vector<32x1xi32>
    %c31_i32_46 = arith.constant 31 : i32
    %83 = tpu.dynamic_rotate %31 by %c31_i32_46 dim 0 : vector<32x256xf32>, i32 -> vector<32x256xf32>
    %cst_47 = arith.constant 0.000000e+00 : f32
    %84 = vector.shape_cast %82 : vector<32x1xi1> to vector<32x1xi1>
    %85 = vector.broadcast %84 : vector<32x1xi1> to vector<32x256xi1>
    %86 = vector.broadcast %cst_47 : f32 to vector<32x256xf32>
    %87 = arith.select %85, %86, %83 : vector<32x256xi1>, vector<32x256xf32>
    %88 = arith.truncf %87 : vector<32x256xf32> to vector<32x256xbf16>
    %c2_48 = arith.constant 2 : index
    %c0_49 = arith.constant 0 : index
    %c0_50 = arith.constant 0 : index
    %89 = vector.load %arg5[%c2_48, %c0_49, %c0_50] : memref<3x256x256xbf16, #tpu.memory_space<vmem>>, vector<1x256x256xbf16>
    %90 = vector.shape_cast %89 : vector<1x256x256xbf16> to vector<256x256xbf16>
    %cst_51 = arith.constant dense<0.000000e+00> : vector<32x256xf32>
    %91 = tpu.matmul %88, %90, %cst_51 {dimension_numbers = #tpu.dot_dimension_numbers<[1], [0], [0], [1], [0, 0, 1, 1], [], []>} : vector<32x256xbf16>, vector<256x256xbf16>, vector<32x256xf32> -> vector<32x256xf32>
    %92 = arith.addf %64, %91 : vector<32x256xf32>
    %c0_52 = arith.constant 0 : index
    %c0_53 = arith.constant 0 : index
    %93 = vector.load %arg6[%c0_52, %c0_53] : memref<1x256xf32, #tpu.memory_space<vmem>>, vector<1x256xf32>
    %94 = vector.broadcast %93 : vector<1x256xf32> to vector<32x256xf32>
    %95 = arith.addf %92, %94 : vector<32x256xf32>
    %cst_54 = arith.constant 0.000000e+00 : f32
    %96 = vector.broadcast %cst_54 : f32 to vector<32x256xf32>
    %97 = arith.cmpf ogt, %95, %96 : vector<32x256xf32>
    %cst_55 = arith.constant 2.000000e-01 : f32
    %98 = vector.broadcast %cst_55 : f32 to vector<32x256xf32>
    %99 = arith.mulf %98, %95 : vector<32x256xf32>
    %100 = arith.select %97, %95, %99 : vector<32x256xi1>, vector<32x256xf32>
    %c0_56 = arith.constant 0 : index
    %c0_57 = arith.constant 0 : index
    %101 = vector.load %arg7[%c0_56, %c0_57] : memref<32x256xf32, #tpu.memory_space<vmem>>, vector<32x256xf32>
    tpu.vector_store %arg7[%c0_56, %c0_57], %100 {strides = array<i32>} : memref<32x256xf32, #tpu.memory_space<vmem>>, vector<32x256xf32>,
    return
  }
  func.func @transform_0(%arg0: i32) -> (i32, i32) {
    %c0_i32 = arith.constant 0 : i32
    %c0_i32_0 = arith.constant 0 : i32
    return %arg0, %c0_i32 : i32, i32
  }
  func.func @transform_1(%arg0: i32) -> (i32, i32, i32) {
    %c0_i32 = arith.constant 0 : i32
    %c0_i32_0 = arith.constant 0 : i32
    %c0_i32_1 = arith.constant 0 : i32
    %c0_i32_2 = arith.constant 0 : i32
    return %c0_i32, %c0_i32_0, %c0_i32_1 : i32, i32, i32
  }
  func.func @transform_2(%arg0: i32) -> (i32, i32, i32) {
    %c0_i32 = arith.constant 0 : i32
    %c0_i32_0 = arith.constant 0 : i32
    %c0_i32_1 = arith.constant 0 : i32
    %c0_i32_2 = arith.constant 0 : i32
    return %c0_i32, %c0_i32_0, %c0_i32_1 : i32, i32, i32
  }
  func.func @transform_3(%arg0: i32) -> (i32, i32) {
    %c0_i32 = arith.constant 0 : i32
    %c0_i32_0 = arith.constant 0 : i32
    %c0_i32_1 = arith.constant 0 : i32
    return %c0_i32, %c0_i32_0 : i32, i32
  }
  func.func @transform_4(%arg0: i32) -> (i32, i32, i32) {
    %c0_i32 = arith.constant 0 : i32
    %c0_i32_0 = arith.constant 0 : i32
    %c0_i32_1 = arith.constant 0 : i32
    %c0_i32_2 = arith.constant 0 : i32
    return %c0_i32, %c0_i32_0, %c0_i32_1 : i32, i32, i32
  }
  func.func @transform_5(%arg0: i32) -> (i32, i32) {
    %c0_i32 = arith.constant 0 : i32
    %c0_i32_0 = arith.constant 0 : i32
    %c0_i32_1 = arith.constant 0 : i32
    return %c0_i32, %c0_i32_0 : i32, i32
  }
  func.func @transform_6(%arg0: i32) -> (i32, i32) {
    %c0_i32 = arith.constant 0 : i32
    %c0_i32_0 = arith.constant 0 : i32
    return %arg0, %c0_i32 : i32, i32
  }
}

</mosaic_0001>

<bundles_post_ra>
// kernel: tile.13
= control target key start
LH: loop header
LB: loop body
LE: loop exit
PB: predicated region body
PF: predicated region fallthrough
CT: control target
= control target key end

     0   :  { %s40_s0 = inlined_call_operand.vmem [shape: f32[8], index: 0, kind: input, shape index: {}]   ;;  %s41_s1 = inlined_call_operand.vmem [shape: f32[32,8], index: 1, kind: output, shape index: {}]  }
   0x1   :  { %v4_v0 = vld [vmem:[%s40_s0] ss:$0 sm:$0xff] }
   0x2   :  { %5 = vst [vmem:[%s41_s1] sm:$0xff] %v4_v0 }
   0x3   :  { %12 = vst [vmem:[%s41_s1 + $0x8] sm:$0xff] %v4_v0 }
   0x4   :  { %13 = vst [vmem:[%s41_s1 + $0x10] sm:$0xff] %v4_v0 }
   0x5   :  { %14 = vst [vmem:[%s41_s1 + $0x18] sm:$0xff] %v4_v0 }

// kernel: tile.14
= control target key start
LH: loop header
LB: loop body
LE: loop exit
PB: predicated region body
PF: predicated region fallthrough
CT: control target
= control target key end

     0   :  { %s7_s6 = smov 3  ;;  %s21_s9 = smov 3  ;;  %vm4_vm0 = vcmask 64512   ;;  %vm11_vm1 = vcmask 1048512   ;;  %vm18_vm2 = vcmask 982912   ;;  %vm25_vm3 = vcmask 917312   ;;  %s233_s0 = inlined_call_operand.vmem [shape: f32[32,8], index: 0, kind: input, shape index: {}]   ;;  %s234_s1 = inlined_call_operand.vmem [shape: f32[1,256], index: 1, kind: output, shape index: {}]  }
   0x1   :  { %v123_v0 = vld [vmem:[%s233_s0 + $0xf] ss:$16 sm:%s7_s6]   ;;  %s154_s10 = smov 120   ;;  %v125_v1 = vld [vmem:[%s233_s0 + $0xd] ss:$16 sm:%s21_s9]   ;;  %s155_s13 = smov 104  }
   0x2   :  { %9 = vrot.lane.b32.xlu0 %v123_v0, %s154_s10  ;;  %23 = vrot.lane.b32.xlu1 %v125_v1, %s155_s13  ;;  %s14_s14 = smov 3  ;;  %s28_s15 = smov 3  ;;  %vm32_vm4 = vcmask 851712   ;;  %vm39_vm5 = vcmask 786112   ;;  %vm46_vm6 = vcmask 720512   ;;  %vm53_vm7 = vcmask 654912  }
   0x3   :  { %v124_v2 = vld [vmem:[%s233_s0 + $0xe] ss:$16 sm:%s14_s14]   ;;  %v126_v3 = vld [vmem:[%s233_s0 + $0xc] ss:$16 sm:%s28_s15]   ;;  %s35_s20 = smov 3  ;;  %s156_s23 = smov 112  }
   0x4   :  { %v127_v4 = vld [vmem:[%s233_s0 + $0xb] ss:$16 sm:%s35_s20]   ;;  %s157_s24 = smov 88   ;;  %s158_s25 = smov 96   ;;  %vm60_vm8 = vcmask 589312   ;;  %vm67_vm9 = vcmask 523712  }
   0x5   :  { %37 = vrot.lane.b32.xlu2 %v127_v4, %s157_s24  ;;  %s49_s26 = smov 3  ;;  %s42_s27 = smov 3  ;;  %vm74_vm10 = vcmask 458112   ;;  %vm81_vm11 = vcmask 392512   ;;  %vm88_vm12 = vcmask 326912   ;;  %vm95_vm13 = vcmask 261312  }
   0x6   :  { %s56_s28 = smov 3  ;;  %v129_v5 = vld [vmem:[%s233_s0 + $0x9] ss:$16 sm:%s49_s26]   ;;  %v128_v6 = vld [vmem:[%s233_s0 + $0xa] ss:$16 sm:%s42_s27]   ;;  %s159_s6 = smov 72  }
   0x7   :  { %v130_v7 = vld [vmem:[%s233_s0 + $0x8] ss:$16 sm:%s56_s28]   ;;  %s160_s7 = smov 80   ;;  %s161_s8 = smov 64   ;;  %vm102_vm14 = vcmask 195712   ;;  %vm109_vm15 = vcmask 130112  }
   0x8   :  { %s70_s9 = smov 3  ;;  %s63_s10 = smov 3 }
   0x9   :  { %s77_s11 = smov 3  ;;  %v132_v8 = vld [vmem:[%s233_s0 + $0x6] ss:$16 sm:%s70_s9]   ;;  %v131_v9 = vld [vmem:[%s233_s0 + $0x7] ss:$16 sm:%s63_s10]   ;;  %s162_s18 = smov 48  }
   0xa   :  { %16 = vrot.lane.b32.xlu0 %v124_v2, %s156_s23  ;;  %30 = vrot.lane.b32.xlu1 %v126_v3, %s158_s25  ;;  %v133_v10 = vld [vmem:[%s233_s0 + $0x5] ss:$16 sm:%s77_s11]   ;;  %s163_s19 = smov 56   ;;  %s164_s20 = smov 40  }
   0xb   :  { %s91_s21 = smov 3  ;;  %s84_s22 = smov 3 }
   0xc   :  { %s98_s23 = smov 3  ;;  %v135_v11 = vld [vmem:[%s233_s0 + $0x3] ss:$16 sm:%s91_s21]   ;;  %v134_v12 = vld [vmem:[%s233_s0 + $0x4] ss:$16 sm:%s84_s22]   ;;  %s165_s30 = smov 24  }
   0xd   :  { %44 = vrot.lane.b32.xlu2 %v128_v6, %s160_s7  ;;  %v136_v13 = vld [vmem:[%s233_s0 + $0x2] ss:$16 sm:%s98_s23]   ;;  %s166_s2 = smov 32   ;;  %s167_s3 = smov 16  }
   0xe   :  { %s105_s4 = smov 3  ;;  %s168_s7 = smov 8  }
   0xf   :  { %v137_v14 = vld [vmem:[%s233_s0 + $0x1] ss:$16 sm:%s105_s4]  }
  0x12   :  { %51 = vrot.lane.b32.xlu0 %v129_v5, %s159_s6  ;;  %58 = vrot.lane.b32.xlu1 %v130_v7, %s161_s8  ;;  %s2_s8 = smov 3 }
  0x13   :  { %v3_v15 = vld [vmem:[%s233_s0] ss:$16 sm:%s2_s8]  }
  0x14   :  { %5 = vst.msk [vmem:[#allocation0] ss:$8 sm:$0x3] %vm4_vm0, %v3_v15  }
  0x15   :  { %65 = vrot.lane.b32.xlu2 %v131_v9, %s163_s19 }
  0x1a   :  { %72 = vrot.lane.b32.xlu0 %v132_v8, %s162_s18  ;;  %79 = vrot.lane.b32.xlu1 %v133_v10, %s164_s20 }
  0x1d   :  { %86 = vrot.lane.b32.xlu2 %v134_v12, %s166_s2 }
  0x22   :  { %93 = vrot.lane.b32.xlu0 %v135_v11, %s165_s30  ;;  %100 = vrot.lane.b32.xlu1 %v136_v13, %s167_s3 }
  0x25   :  { %107 = vrot.lane.b32.xlu2 %v137_v14, %s168_s7 }
  0x5f   :  { %v38_v16 = vpop.permute.xlu2 %37  }
  0x67   :  { %v45_v17 = vpop.permute.xlu2 %44  }
  0x6f   :  { %v66_v19 = vpop.permute.xlu2 %65  }
  0x74   :  { %v10_v18 = vpop.permute.xlu0 %9   ;;  %v24_v20 = vpop.permute.xlu1 %23  }
  0x75   :  { %12 = vst.msk [vmem:[#allocation0] ss:$8 sm:$0x3] %vm11_vm1, %v10_v18  }
  0x77   :  { %v87_v22 = vpop.permute.xlu2 %86  }
  0x7c   :  { %v17_v21 = vpop.permute.xlu0 %16   ;;  %v31_v23 = vpop.permute.xlu1 %30  }
  0x7d   :  { %19 = vst.msk [vmem:[#allocation0] ss:$8 sm:$0x3] %vm18_vm2, %v17_v21  }
  0x7e   :  { %26 = vst.msk [vmem:[#allocation0] ss:$8 sm:$0x3] %vm25_vm3, %v24_v20  }
  0x7f   :  { %33 = vst.msk [vmem:[#allocation0] ss:$8 sm:$0x3] %vm32_vm4, %v31_v23   ;;  %v108_v25 = vpop.permute.xlu2 %107  }
  0x80   :  { %40 = vst.msk [vmem:[#allocation0] ss:$8 sm:$0x3] %vm39_vm5, %v38_v16  }
  0x81   :  { %47 = vst.msk [vmem:[#allocation0] ss:$8 sm:$0x3] %vm46_vm6, %v45_v17  }
  0x84   :  { %v52_v24 = vpop.permute.xlu0 %51   ;;  %v59_v26 = vpop.permute.xlu1 %58  }
  0x85   :  { %54 = vst.msk [vmem:[#allocation0] ss:$8 sm:$0x3] %vm53_vm7, %v52_v24  }
  0x86   :  { %61 = vst.msk [vmem:[#allocation0] ss:$8 sm:$0x3] %vm60_vm8, %v59_v26  }
  0x87   :  { %68 = vst.msk [vmem:[#allocation0] ss:$8 sm:$0x3] %vm67_vm9, %v66_v19  }
  0x8c   :  { %v73_v27 = vpop.permute.xlu0 %72   ;;  %v80_v28 = vpop.permute.xlu1 %79  }
  0x8d   :  { %75 = vst.msk [vmem:[#allocation0] ss:$8 sm:$0x3] %vm74_vm10, %v73_v27  }
  0x8e   :  { %82 = vst.msk [vmem:[#allocation0] ss:$8 sm:$0x3] %vm81_vm11, %v80_v28  }
  0x8f   :  { %89 = vst.msk [vmem:[#allocation0] ss:$8 sm:$0x3] %vm88_vm12, %v87_v22  }
  0x94   :  { %v94_v29 = vpop.permute.xlu0 %93   ;;  %v101_v30 = vpop.permute.xlu1 %100  }
  0x95   :  { %96 = vst.msk [vmem:[#allocation0] ss:$8 sm:$0x3] %vm95_vm13, %v94_v29  }
  0x96   :  { %103 = vst.msk [vmem:[#allocation0] ss:$8 sm:$0x3] %vm102_vm14, %v101_v30  }
  0x97   :  { %110 = vst.msk [vmem:[#allocation0] ss:$8 sm:$0x3] %vm109_vm15, %v108_v25  }
  0x9e   :  { %v113_v31 = vld [vmem:[#allocation0] sm:$0x1]  ;;  %v118_v32 = vld [vmem:[#allocation0 + $0x8] sm:$0x1] }
  0x9f   :  { %116 = vst [vmem:[%s234_s1] sm:$0x1] %v113_v31 }
  0xa0   :  { %138 = vst [vmem:[%s234_s1 + $0x1] sm:$0x1] %v118_v32 }

// kernel: up_forward.1
= control target key start
LH: loop header
LB: loop body
LE: loop exit
PB: predicated region body
PF: predicated region fallthrough
CT: control target
= control target key end

     0   :  { %s2616_s21 = smov 0   ;;  %s3699_s0 = inlined_call_operand.vmem [shape: bf16[32,64], index: 0, kind: input, shape index: {}]   ;;  %s3700_s1 = inlined_call_operand.vmem [shape: bf16[3,32,16], index: 1, kind: input, shape index: {}]   ;;  %s3701_s2 = inlined_call_operand.vmem [shape: bf16[3,64,256], index: 2, kind: input, shape index: {}]   ;;  %s3702_s3 = inlined_call_operand.vmem [shape: f32[1,256], index: 3, kind: input, shape index: {}]   ;;  %s3703_s4 = inlined_call_operand.vmem [shape: bf16[3,256,256], index: 4, kind: input, shape index: {}]   ;;  %s3704_s5 = inlined_call_operand.vmem [shape: f32[1,256], index: 5, kind: input, shape index: {}]   ;;  %s3705_s6 = inlined_call_operand.vmem [shape: f32[64,256], index: 6, kind: output, shape index: {}]  }
   0x1 LB: > { %s1774_s22 = sadd.s32 4294967295, %s2578_s21   ;;  %p1778_p0 = scmp.ge.s32.totalorder %s2578_s21, 1  ;;  %s2578_s21 = sphi %s2616_s21, %s16_s21  }
   0x2   : > { %p213_p1 = scmp.lt.s32.totalorder %s2578_s21, 3 }
   0x4   : > { %p214_p2 = pnand %p1778_p0, %p213_p1 }
   0x5   : > { %s1779_s23 = sshll.u32 (!%p214_p2), %s1774_s22, 1  ;;  %s1781_s14 = sshll.u32 (!%p214_p2), %s1774_s22, 2 }
   0x6   : > { %217 = sbr.rel (%p214_p2) target bundleno = 742 (0x2e6), region = 44  ;;  %p245_p3 = scmp.lt.s32.totalorder (!%p214_p2), %s1779_s23, 3 }
   0x7   : > { %p251_p4 = scmp.lt.s32.totalorder (!%p214_p2), %s1781_s14, 7 }
   0xb   : > { %s3711_s23 = smov (!%p245_p3, %s1779_s23), 3  ;;  %v2434_v1 = vld [vmem:[%s3700_s1] sm:$0xff]  ;;  %v2435_v2 = vld [vmem:[%s3700_s1 + $0x8] sm:$0xff]  ;;  %vm280_vm0 = vcmask 130048   ;;  %v1882_v3 = vld [vmem:[%s3701_s2 + $0x30] sm:$0xf] }
   0xc   : > { %s1780_s24 = sshll.u32 %s3711_s23, 2  ;;  %v2443_v4 = vld [vmem:[%s3701_s2 + $0x34] sm:$0xf0]  ;;  %v2442_v5 = vld [vmem:[%s3701_s2 + $0x34] sm:$0xf]  ;;  %vm407_vm1 = vcmask 523264  }
   0xd   : > { %s248_s27 = scalar_lea.vmem %s3699_s0, %s1780_s24  ;;  %v1883_v6 = vor.u32 %v2443_v4, %v1882_v3  ;;  %v1884_v7 = vld [vmem:[%s3701_s2 + $0x38] sm:$0xf0]  ;;  %v2444_v9 = vld [vmem:[%s3700_s1 + $0x10] sm:$0xff]  ;;  %v1874_v11 = vld [vmem:[%s3701_s2 + $0x20] sm:$0xf]  ;;  %vm2580_vm12 = vmmov 1  }
   0xe   : > { %v2629_v0 = vld [vmem:[%s248_s27] sm:$0xff]  ;;  %v1887_v8 = vor.u32 %v2442_v5, %v1884_v7  ;;  %v2445_v10 = vld [vmem:[%s3700_s1 + $0x18] sm:$0xff]  ;;  %v2441_v12 = vld [vmem:[%s3701_s2 + $0x24] sm:$0xf0]  ;;  %s3713_s14 = smov (!%p251_p4, %s1781_s14), 7 }
   0xf   : > { %294 = vmatpush.bf16.msra.mxu0 %v2629_v0  ;;  %2562 = vmatpush.bf16.msra.mxu1 %v2629_v0  ;;  %v2440_v13 = vld [vmem:[%s3701_s2 + $0x24] sm:$0xf]  ;;  %v1875_v14 = vor.u32 %v2441_v12, %v1874_v11  ;;  %v1876_v15 = vld [vmem:[%s3701_s2 + $0x28] sm:$0xf0]  ;;  %v1866_v17 = vld [vmem:[%s3701_s2 + $0x10] sm:$0xf] }
  0x10   : > { %v1879_v16 = vor.u32 %v2440_v13, %v1876_v15  ;;  %v2439_v18 = vld [vmem:[%s3701_s2 + $0x14] sm:$0xf0]  ;;  %v2438_v19 = vld [vmem:[%s3701_s2 + $0x14] sm:$0xf]  ;;  %v1868_v21 = vld [vmem:[%s3701_s2 + $0x18] sm:$0xf0] }
  0x11   : > { %v1867_v20 = vor.u32 %v2439_v18, %v1866_v17  ;;  %v1871_v22 = vor.u32 %v2438_v19, %v1868_v21  ;;  %v1858_v23 = vld [vmem:[%s3701_s2] sm:$0xf]  ;;  %v2437_v24 = vld [vmem:[%s3701_s2 + $0x4] sm:$0xf0]  ;;  %v2436_v25 = vld [vmem:[%s3701_s2 + $0x4] sm:$0xf] }
  0x12   : > { %1796 = vmatmul.msk.bf16.vlgmr.msra.gmra.mxu0 %vm280_vm0, %v2434_v1  ;;  %1797 = vmatmul.msk.bf16.vlgmr.msra.gmra.mxu1 %vm280_vm0, %v2435_v2  ;;  %v1859_v26 = vor.u32 %v2437_v24, %v1858_v23  ;;  %v1860_v27 = vld [vmem:[%s3701_s2 + $0x8] sm:$0xf0]  ;;  %v1846_v29 = vld [vmem:[%s3701_s2 + $0x70] sm:$0xf]  ;;  %v2453_v30 = vld [vmem:[%s3701_s2 + $0x74] sm:$0xf0] }
  0x13   : > { %344 = vmatpush.bf16.msrb.mxu1 %v2629_v0  ;;  %502 = vmatpush.bf16.msrb.mxu0 %v1883_v6  ;;  %v1863_v28 = vor.u32 %v2436_v25, %v1860_v27  ;;  %v1847_v31 = vor.u32 %v2453_v30, %v1846_v29  ;;  %v2452_v32 = vld [vmem:[%s3701_s2 + $0x74] sm:$0xf]  ;;  %v1848_v33 = vld [vmem:[%s3701_s2 + $0x78] sm:$0xf0]  ;;  %v1838_v35 = vld [vmem:[%s3701_s2 + $0x60] sm:$0xf] }
  0x14   : > { %v1851_v34 = vor.u32 %v2452_v32, %v1848_v33  ;;  %v2451_v36 = vld [vmem:[%s3701_s2 + $0x64] sm:$0xf0]  ;;  %v2450_v37 = vld [vmem:[%s3701_s2 + $0x64] sm:$0xf]  ;;  %v1840_v39 = vld [vmem:[%s3701_s2 + $0x68] sm:$0xf0] }
  0x15   : > { %418 = vmatpush.bf16.msra.mxu2 %v1847_v31  ;;  %v1839_v38 = vor.u32 %v2451_v36, %v1838_v35  ;;  %v1843_v40 = vor.u32 %v2450_v37, %v1840_v39  ;;  %v1830_v41 = vld [vmem:[%s3701_s2 + $0x50] sm:$0xf]  ;;  %v2449_v42 = vld [vmem:[%s3701_s2 + $0x54] sm:$0xf0]  ;;  %v2448_v43 = vld [vmem:[%s3701_s2 + $0x54] sm:$0xf] }
  0x16   : > { %437 = vmatpush.bf16.msra.mxu3 %v1851_v34  ;;  %v1831_v44 = vor.u32 %v2449_v42, %v1830_v41  ;;  %v1832_v45 = vld [vmem:[%s3701_s2 + $0x58] sm:$0xf0]  ;;  %v1822_v47 = vld [vmem:[%s3701_s2 + $0x40] sm:$0xf]  ;;  %v2447_v48 = vld [vmem:[%s3701_s2 + $0x44] sm:$0xf0] }
  0x17   : > { %521 = vmatpush.bf16.msra.mxu1 %v1887_v8  ;;  %503 = vmatpush.bf16.msrb.mxu0 %v1875_v14  ;;  %v1835_v46 = vor.u32 %v2448_v43, %v1832_v45  ;;  %v2446_v49 = vld [vmem:[%s3701_s2 + $0x44] sm:$0xf]  ;;  %v1823_v50 = vor.u32 %v2447_v48, %v1822_v47  ;;  %v1824_v51 = vld [vmem:[%s3701_s2 + $0x48] sm:$0xf0]  ;;  %v1940_v3 = vld [vmem:[%s3701_s2 + $0xb0] sm:$0xf] }
  0x18   : > { %v1827_v52 = vor.u32 %v2446_v49, %v1824_v51  ;;  %v2454_v1 = vld [vmem:[%s3700_s1 + $0x20] sm:$0xff]  ;;  %v2455_v2 = vld [vmem:[%s3700_s1 + $0x28] sm:$0xff]  ;;  %v2463_v4 = vld [vmem:[%s3701_s2 + $0xb4] sm:$0xf0]  ;;  %s2432_s22 = sshll.u32 %s3713_s14, 4 }
  0x19   : > { %419 = vmatpush.bf16.msra.mxu2 %v1839_v38  ;;  %v1941_v5 = vor.u32 %v2463_v4, %v1940_v3  ;;  %v2462_v6 = vld [vmem:[%s3701_s2 + $0xb4] sm:$0xf]  ;;  %v1942_v7 = vld [vmem:[%s3701_s2 + $0xb8] sm:$0xf0]  ;;  %v1932_v8 = vld [vmem:[%s3701_s2 + $0xa0] sm:$0xf]  ;;  %s3666_s19 = scalar_lea.vmem %s3705_s6, %s2432_s22 }
  0x1a   : > { %438 = vmatpush.bf16.msra.mxu3 %v1843_v40  ;;  %v2460_v12 = vld [vmem:[%s3701_s2 + $0xa4] sm:$0xf]  ;;  %v1934_v13 = vld [vmem:[%s3701_s2 + $0xa8] sm:$0xf0]  ;;  %v1924_v14 = vld [vmem:[%s3701_s2 + $0x90] sm:$0xf] }
  0x1b   : > { %522 = vmatpush.bf16.msra.mxu1 %v1879_v16  ;;  %504 = vmatpush.bf16.msrb.mxu0 %v1867_v20  ;;  %v1937_v15 = vor.u32 %v2460_v12, %v1934_v13  ;;  %v2459_v16 = vld [vmem:[%s3701_s2 + $0x94] sm:$0xf0]  ;;  %v2458_v19 = vld [vmem:[%s3701_s2 + $0x94] sm:$0xf]  ;;  %v1926_v20 = vld [vmem:[%s3701_s2 + $0x98] sm:$0xf0] }
  0x1c   : > { %v1925_v17 = vor.u32 %v2459_v16, %v1924_v14  ;;  %v1916_v21 = vld [vmem:[%s3701_s2 + $0x80] sm:$0xf]  ;;  %v2457_v23 = vld [vmem:[%s3701_s2 + $0x84] sm:$0xf0]  ;;  %v2456_v25 = vld [vmem:[%s3701_s2 + $0x84] sm:$0xf] }
  0x1d   : > { %420 = vmatpush.bf16.msra.mxu2 %v1831_v44  ;;  %v1917_v24 = vor.u32 %v2457_v23, %v1916_v21  ;;  %v2104_v40 = vld [vmem:[%s3703_s4 + $0xf0] sm:$0xf]  ;;  %v2527_v41 = vld [vmem:[%s3703_s4 + $0xf4] sm:$0xf0]  ;;  %v2526_v42 = vld [vmem:[%s3703_s4 + $0xf4] sm:$0xf] }
  0x1e   : > { %439 = vmatpush.bf16.msra.mxu3 %v1835_v46  ;;  %v2105_v43 = vor.u32 %v2527_v41, %v2104_v40  ;;  %v2106_v44 = vld [vmem:[%s3703_s4 + $0xf8] sm:$0xf0]  ;;  %v2096_v46 = vld [vmem:[%s3703_s4 + $0xe0] sm:$0xf]  ;;  %v2525_v47 = vld [vmem:[%s3703_s4 + $0xe4] sm:$0xf0] }
  0x1f   : > { %523 = vmatpush.bf16.msra.mxu1 %v1871_v22  ;;  %505 = vmatpush.bf16.msrb.mxu0 %v1859_v26  ;;  %v1929_v22 = vor.u32 %v2458_v19, %v1926_v20  ;;  %v1918_v26 = vld [vmem:[%s3701_s2 + $0x88] sm:$0xf0]  ;;  %v2109_v45 = vor.u32 %v2526_v42, %v2106_v44  ;;  %v2097_v48 = vor.u32 %v2525_v47, %v2096_v46  ;;  %v2524_v49 = vld [vmem:[%s3703_s4 + $0xe4] sm:$0xf]  ;;  %v2032_v4 = vld [vmem:[%s3703_s4 + $0x60] sm:$0xf] }
  0x20   : > { %v1921_v27 = vor.u32 %v2456_v25, %v1918_v26  ;;  %v2034_v3 = vld [vmem:[%s3703_s4 + $0x68] sm:$0xf0]  ;;  %v2506_v14 = vld [vmem:[%s3703_s4 + $0x54] sm:$0xf]  ;;  %v2024_v16 = vld [vmem:[%s3703_s4 + $0x50] sm:$0xf] }
  0x21   : > { %421 = vmatpush.bf16.msra.mxu2 %v1823_v50  ;;  %v2098_v50 = vld [vmem:[%s3703_s4 + $0xe8] sm:$0xf0]  ;;  %v2507_v19 = vld [vmem:[%s3703_s4 + $0x54] sm:$0xf0]  ;;  %v2074_v26 = vld [vmem:[%s3703_s4 + $0xb8] sm:$0xf0] }
  0x22   : > { %1810 = vmatmul.msk.bf16.vlgmr.msrb.gmra.mxu1 %vm280_vm0, %v2444_v9  ;;  %440 = vmatpush.bf16.msra.mxu3 %v1827_v52  ;;  %v1945_v9 = vor.u32 %v2462_v6, %v1942_v7  ;;  %v2101_v52 = vor.u32 %v2524_v49, %v2098_v50  ;;  %v2509_v6 = vld [vmem:[%s3703_s4 + $0x64] sm:$0xf0]  ;;  %v2082_v12 = vld [vmem:[%s3703_s4 + $0xc8] sm:$0xf0]  ;;  %v2025_v21 = vor.u32 %v2507_v19, %v2024_v16  ;;  %v2519_v23 = vld [vmem:[%s3703_s4 + $0xb4] sm:$0xf0] }
  0x23   : > { %524 = vmatpush.bf16.msra.mxu1 %v1863_v28  ;;  %v2033_v7 = vor.u32 %v2509_v6, %v2032_v4  ;;  %v2064_v42 = vld [vmem:[%s3703_s4 + $0xa0] sm:$0xf]  ;;  %v2516_v44 = vld [vmem:[%s3703_s4 + $0xa4] sm:$0xf]  ;;  %v2066_v46 = vld [vmem:[%s3703_s4 + $0xa8] sm:$0xf0] }
  0x24   : > { %656 = vmatpush.bf16.msra.mxu0 %v1945_v9  ;;  %v2521_v9 = vld [vmem:[%s3703_s4 + $0xc4] sm:$0xf0]  ;;  %v2069_v47 = vor.u32 %v2516_v44, %v2066_v46  ;;  %v2010_v49 = vld [vmem:[%s3703_s4 + $0x38] sm:$0xf0]  ;;  %v2008_v50 = vld [vmem:[%s3703_s4 + $0x30] sm:$0xf] }
  0x25   : > { %564 = vmatpush.bf16.msrb.mxu2 %v2629_v0  ;;  %v2501_v6 = vld [vmem:[%s3703_s4 + $0x24] sm:$0xf0]  ;;  %v2498_v16 = vld [vmem:[%s3703_s4 + $0x14] sm:$0xf]  ;;  %v1992_v19 = vld [vmem:[%s3703_s4 + $0x10] sm:$0xf] }
  0x26   : > { %637 = vmatpush.bf16.msrb.mxu3 %v1941_v5  ;;  %v1986_v44 = vld [vmem:[%s3703_s4 + $0x8] sm:$0xf0]  ;;  %v2497_v46 = vld [vmem:[%s3703_s4 + $0x4] sm:$0xf0] }
  0x28   : > { %657 = vmatpush.bf16.msra.mxu0 %v1937_v15  ;;  %v2026_v15 = vld [vmem:[%s3703_s4 + $0x58] sm:$0xf0] }
  0x2c   : > { %658 = vmatpush.bf16.msra.mxu0 %v1929_v22  ;;  %v2072_v22 = vld [vmem:[%s3703_s4 + $0xb0] sm:$0xf] }
  0x2d   : > { %v2073_v25 = vor.u32 %v2519_v23, %v2072_v22  ;;  %v2499_v23 = vld [vmem:[%s3703_s4 + $0x14] sm:$0xf0] }
  0x30   : > { %659 = vmatpush.bf16.msra.mxu0 %v1921_v27 }
  0x32   : > { %1811 = vmatmul.msk.bf16.gmra.mxu1 %vm280_vm0, %v2445_v10  ;;  %v2461_v10 = vld [vmem:[%s3701_s2 + $0xa4] sm:$0xf0] }
  0x33   : > { %v1933_v11 = vor.u32 %v2461_v10, %v1932_v8  ;;  %v2080_v8 = vld [vmem:[%s3703_s4 + $0xc0] sm:$0xf]  ;;  %v2520_v10 = vld [vmem:[%s3703_s4 + $0xc4] sm:$0xf] }
  0x34   : > { %v2085_v13 = vor.u32 %v2520_v10, %v2082_v12  ;;  %v2513_v10 = vld [vmem:[%s3703_s4 + $0x84] sm:$0xf0] }
  0x35   : > { %638 = vmatpush.bf16.msrb.mxu3 %v1933_v11  ;;  %v2081_v11 = vor.u32 %v2521_v9, %v2080_v8  ;;  %v2048_v9 = vld [vmem:[%s3703_s4 + $0x80] sm:$0xf] }
  0x36   : > { %v2049_v12 = vor.u32 %v2513_v10, %v2048_v9  ;;  %v2232_v9 = vld [vmem:[%s3703_s4 + $0x1d0] sm:$0xf]  ;;  %v2491_v10 = vld [vmem:[%s3703_s4 + $0x1d4] sm:$0xf0] }
  0x39   : > { %639 = vmatpush.bf16.msrb.mxu3 %v1925_v17  ;;  %v2029_v17 = vor.u32 %v2506_v14, %v2026_v15 }
  0x3d   : > { %640 = vmatpush.bf16.msrb.mxu3 %v1917_v24  ;;  %v2518_v24 = vld [vmem:[%s3703_s4 + $0xb4] sm:$0xf] }
  0x3e   : > { %v2077_v27 = vor.u32 %v2518_v24, %v2074_v26  ;;  %v2248_v26 = vld [vmem:[%s3703_s4 + $0x1f0] sm:$0xf] }
  0x8f   : > { %v296_v53 = vpop.f32.mrf.mxu0  ;;  %v301_v54 = vpop.f32.mrf.mxu1 }
  0x97   : > { %v298_v55 = vpop.f32.mrf.mxu0  ;;  %v303_v56 = vpop.f32.mrf.mxu1 }
  0x98   : > { %v306_v57 = vpack.c.bf16 %v298_v55, %v296_v53  ;;  %v307_v61 = vpack.c.bf16 %v303_v56, %v301_v54  ;;  %v2510_v53 = vld [vmem:[%s3703_s4 + $0x74] sm:$0xf]  ;;  %v2042_v54 = vld [vmem:[%s3703_s4 + $0x78] sm:$0xf0]  ;;  %v2040_v55 = vld [vmem:[%s3703_s4 + $0x70] sm:$0xf] }
  0x99   : > { %v2045_v56 = vor.u32 %v2510_v53, %v2042_v54  ;;  %v2503_v54 = vld [vmem:[%s3703_s4 + $0x34] sm:$0xf0] }
  0x9a   : > { %1888 = vmatmul.msk.bf16.vlgmr.msrb.gmra.mxu0 %vm407_vm1, %v306_v57  ;;  %1890 = vmatmul.msk.bf16.vlgmr.msra.gmra.mxu1 %vm407_vm1, %v306_v57  ;;  %v2511_v57 = vld [vmem:[%s3703_s4 + $0x74] sm:$0xf0] }
  0x9b   : > { %1097 = vmatpush.bf16.msrb.mxu0 %v2109_v45 }
  0x9f   : > { %v346_v58 = vpop.f32.mrf.mxu1  ;;  %1098 = vmatpush.bf16.msrb.mxu0 %v2101_v52  ;;  %v679_v52 = vld [vmem:[%s3702_s3] sm:$0x3] }
  0xa0   : > { %v2996_v4 = vperm.slane %v679_v52, 1 }
  0xa7   : > { %v348_v59 = vpop.f32.mrf.mxu1 }
  0xa8   : > { %v356_v60 = vpack.c.bf16 %v348_v59, %v346_v58  ;;  %v2041_v58 = vor.u32 %v2511_v57, %v2040_v55  ;;  %v2088_v59 = vld [vmem:[%s3703_s4 + $0xd0] sm:$0xf]  ;;  %v2009_v55 = vor.u32 %v2503_v54, %v2008_v50  ;;  %v2515_v57 = vld [vmem:[%s3703_s4 + $0x94] sm:$0xf0]  ;;  %v2493_v50 = vld [vmem:[%s3703_s4 + $0x1e4] sm:$0xf0] }
  0xaa   : > { %1852 = vmatmul.msk.bf16.vlgmr.msra.gmra.mxu2 %vm407_vm1, %v356_v60  ;;  %1854 = vmatmul.msk.bf16.vlgmr.msra.gmra.mxu3 %vm407_vm1, %v356_v60  ;;  %v2523_v60 = vld [vmem:[%s3703_s4 + $0xd4] sm:$0xf0] }
  0xab   : > { %1889 = vmatmul.msk.bf16.gmra.mxu0 %vm407_vm1, %v307_v61  ;;  %1891 = vmatmul.msk.bf16.gmra.mxu1 %vm407_vm1, %v307_v61  ;;  %v2522_v61 = vld [vmem:[%s3703_s4 + $0xd4] sm:$0xf] }
  0xac   : > { %1059 = vmatpush.bf16.msra.mxu2 %v2105_v43  ;;  %1078 = vmatpush.bf16.msra.mxu3 %v2045_v56  ;;  %v2517_v43 = vld [vmem:[%s3703_s4 + $0xa4] sm:$0xf0]  ;;  %v2056_v56 = vld [vmem:[%s3703_s4 + $0x90] sm:$0xf] }
  0xad   : > { %1040 = vmatpush.bf16.msrb.mxu1 %v2041_v58  ;;  %v2065_v45 = vor.u32 %v2517_v43, %v2064_v42  ;;  %v2514_v58 = vld [vmem:[%s3703_s4 + $0x94] sm:$0xf] }
  0xaf   : > { %v351_v62 = vpop.f32.mrf.mxu1 }
  0xb0   : > { %1060 = vmatpush.bf16.msra.mxu2 %v2097_v48  ;;  %v2502_v48 = vld [vmem:[%s3703_s4 + $0x34] sm:$0xf] }
  0xb1   : > { %1041 = vmatpush.bf16.msrb.mxu1 %v2033_v7  ;;  %v2013_v53 = vor.u32 %v2502_v48, %v2010_v49 }
  0xb5   : > { %1042 = vmatpush.bf16.msrb.mxu1 %v2025_v21 }
  0xb7   : > { %v353_v63 = vpop.f32.mrf.mxu1 }
  0xb8   : > { %v357_v0 = vpack.c.bf16 %v353_v63, %v351_v62  ;;  %v2089_v62 = vor.u32 %v2523_v60, %v2088_v59  ;;  %v2090_v63 = vld [vmem:[%s3703_s4 + $0xd8] sm:$0xf0]  ;;  %v2057_v59 = vor.u32 %v2515_v57, %v2056_v56  ;;  %v2492_v56 = vld [vmem:[%s3703_s4 + $0x1e4] sm:$0xf]  ;;  %v2242_v57 = vld [vmem:[%s3703_s4 + $0x1e8] sm:$0xf0] }
  0xb9   : > { %v2058_v60 = vld [vmem:[%s3703_s4 + $0x98] sm:$0xf0] }
  0xba   : > { %1853 = vmatmul.msk.bf16.gmra.mxu2 %vm407_vm1, %v357_v0  ;;  %1855 = vmatmul.msk.bf16.gmra.mxu3 %vm407_vm1, %v357_v0 }
  0xbb   : > { %1061 = vmatpush.bf16.msra.mxu2 %v2089_v62  ;;  %v2061_v62 = vor.u32 %v2514_v58, %v2058_v60  ;;  %v2478_v60 = vld [vmem:[%s3703_s4 + $0x174] sm:$0xf] }
  0xbf   : > { %1062 = vmatpush.bf16.msra.mxu2 %v2081_v11 }
  0xc3   : > { %1063 = vmatpush.bf16.msra.mxu2 %v2073_v25  ;;  %v1993_v25 = vor.u32 %v2499_v23, %v1992_v19  ;;  %v2178_v19 = vld [vmem:[%s3703_s4 + $0x168] sm:$0xf0] }
  0xc7   : > { %1064 = vmatpush.bf16.msra.mxu2 %v2065_v45  ;;  %v1984_v45 = vld [vmem:[%s3703_s4] sm:$0xf] }
  0xc8   : > { %v1985_v49 = vor.u32 %v2497_v46, %v1984_v45 }
  0xca   : > { %1904 = vmatmul.msk.bf16.vlgmr.msrb.gmra.mxu2 %vm280_vm0, %v2454_v1  ;;  %v2093_v1 = vor.u32 %v2522_v61, %v2090_v63  ;;  %v2500_v63 = vld [vmem:[%s3703_s4 + $0x24] sm:$0xf] }
  0xcb   : > { %1065 = vmatpush.bf16.msra.mxu2 %v2057_v59  ;;  %v2245_v59 = vor.u32 %v2492_v56, %v2242_v57  ;;  %v2216_v56 = vld [vmem:[%s3703_s4 + $0x1b0] sm:$0xf]  ;;  %v2487_v57 = vld [vmem:[%s3703_s4 + $0x1b4] sm:$0xf0] }
  0xcc   : > { %1099 = vmatpush.bf16.msrb.mxu0 %v2093_v1  ;;  %v2002_v1 = vld [vmem:[%s3703_s4 + $0x28] sm:$0xf0] }
  0xcf   : > { %1066 = vmatpush.bf16.msra.mxu2 %v2049_v12 }
  0xd0   : > { %1100 = vmatpush.bf16.msrb.mxu0 %v2085_v13  ;;  %v2050_v13 = vld [vmem:[%s3703_s4 + $0x88] sm:$0xf0] }
  0xd4   : > { %1101 = vmatpush.bf16.msrb.mxu0 %v2077_v27  ;;  %v2495_v27 = vld [vmem:[%s3703_s4 + $0x1f4] sm:$0xf0] }
  0xd8   : > { %1102 = vmatpush.bf16.msrb.mxu0 %v2069_v47 }
  0xda   : > { %1905 = vmatmul.msk.bf16.gmra.mxu2 %vm280_vm0, %v2455_v2  ;;  %v2508_v2 = vld [vmem:[%s3703_s4 + $0x64] sm:$0xf] }
  0xdb   : > { %v2037_v5 = vor.u32 %v2508_v2, %v2034_v3  ;;  %v2000_v2 = vld [vmem:[%s3703_s4 + $0x20] sm:$0xf] }
  0xdc   : > { %1103 = vmatpush.bf16.msrb.mxu0 %v2061_v62  ;;  %v2001_v8 = vor.u32 %v2501_v6, %v2000_v2  ;;  %v2186_v62 = vld [vmem:[%s3703_s4 + $0x178] sm:$0xf0] }
  0xdd   : > { %1079 = vmatpush.bf16.msra.mxu3 %v2037_v5  ;;  %v2005_v5 = vor.u32 %v2500_v63, %v2002_v1  ;;  %v2184_v63 = vld [vmem:[%s3703_s4 + $0x170] sm:$0xf] }
  0xe1   : > { %1080 = vmatpush.bf16.msra.mxu3 %v2029_v17  ;;  %v1994_v17 = vld [vmem:[%s3703_s4 + $0x18] sm:$0xf0] }
  0xe2   : > { %v1997_v22 = vor.u32 %v2498_v16, %v1994_v17  ;;  %v2476_v17 = vld [vmem:[%s3703_s4 + $0x164] sm:$0xf] }
  0xe3   : > { %v2181_v23 = vor.u32 %v2476_v17, %v2178_v19 }
 0x117   : > { %v2823_v37 = vpop.f32.mrf.mxu0 }
 0x11f   : > { %v2827_v39 = vpop.f32.mrf.mxu0 }
 0x128   : > { %v2879_v0 = vpop.f32.mrf.mxu0 }
 0x12d   : > { %v2793_v18 = vpop.f32.mrf.mxu2  ;;  %v2825_v38 = vpop.f32.mrf.mxu3 }
 0x12e   : > { %v508_v24 = vadd.f32 %v2823_v37, %v2793_v18  ;;  %v2494_v18 = vld [vmem:[%s3703_s4 + $0x1f4] sm:$0xf] }
 0x130   : > { %v2943_v40 = vpop.f32.mrf.mxu0 }
 0x135   : > { %v2813_v28 = vpop.f32.mrf.mxu2  ;;  %v2853_v51 = vpop.f32.mrf.mxu3 }
 0x13d   : > { %v2815_v29 = vpop.f32.mrf.mxu2  ;;  %v2917_v20 = vpop.f32.mrf.mxu3 }
 0x145   : > { %v2817_v30 = vpop.f32.mrf.mxu2  ;;  %v2984_v61 = vpop.f32.mrf.mxu3 }
 0x14d   : > { %v566_v31 = vpop.f32.mrf.mxu2 }
 0x155   : > { %v568_v32 = vpop.f32.mrf.mxu2 }
 0x156   : > { %v576_v33 = vpack.c.bf16 %v568_v32, %v566_v31  ;;  %v2504_v31 = vld [vmem:[%s3703_s4 + $0x44] sm:$0xf]  ;;  %v2018_v32 = vld [vmem:[%s3703_s4 + $0x48] sm:$0xf0] }
 0x158   : > { %1946 = vmatmul.msk.bf16.vlgmr.msrb.gmra.mxu3 %vm407_vm1, %v576_v33  ;;  %1948 = vmatmul.msk.bf16.vlgmr.msra.gmra.mxu0 %vm407_vm1, %v576_v33  ;;  %v2016_v33 = vld [vmem:[%s3703_s4 + $0x40] sm:$0xf] }
 0x15d   : > { %v571_v34 = vpop.f32.mrf.mxu2 }
 0x165   : > { %v573_v35 = vpop.f32.mrf.mxu2 }
 0x166   : > { %v577_v36 = vpack.c.bf16 %v573_v35, %v571_v34  ;;  %v2021_v34 = vor.u32 %v2504_v31, %v2018_v32  ;;  %v2505_v35 = vld [vmem:[%s3703_s4 + $0x44] sm:$0xf0]  ;;  %v3034_v31 = vperm.slane %v679_v52, 0  ;;  %v717_v32 = vlaneseq }
 0x167   : > { %v2017_v41 = vor.u32 %v2505_v35, %v2016_v33  ;;  %v2249_v33 = vor.u32 %v2495_v27, %v2248_v26  ;;  %v2250_v35 = vld [vmem:[%s3703_s4 + $0x1f8] sm:$0xf0]  ;;  %v2224_v26 = vld [vmem:[%s3703_s4 + $0x1c0] sm:$0xf] }
 0x168   : > { %1947 = vmatmul.msk.bf16.gmra.mxu3 %vm407_vm1, %v577_v36  ;;  %1949 = vmatmul.msk.bf16.gmra.mxu0 %vm407_vm1, %v577_v36  ;;  %v526_v36 = vpop.f32.mrf.mxu1  ;;  %v2253_v43 = vor.u32 %v2494_v18, %v2250_v35  ;;  %v3062_v54 = vshrl.u32 %v717_v32, 7 }
 0x169   : > { %1081 = vmatpush.bf16.msra.mxu3 %v2021_v34  ;;  %1043 = vmatpush.bf16.msrb.mxu1 %v2017_v41  ;;  %v527_v3 = vadd.f32 %v526_v36, %v2825_v38  ;;  %v2512_v38 = vld [vmem:[%s3703_s4 + $0x84] sm:$0xf] }
 0x16a   : > { %v2053_v15 = vor.u32 %v2512_v38, %v2050_v13  ;;  %v2496_v36 = vld [vmem:[%s3703_s4 + $0x4] sm:$0xf]  ;;  %1295 = vmatpush.bf16.msrb.mxu2 %v2249_v33  ;;  %v2490_v38 = vld [vmem:[%s3703_s4 + $0x1d4] sm:$0xf]  ;;  %vm1364_vm5 = vcmp.lt.s32.totalorder %v3062_v54, 7  ;;  %vm819_vm6 = vcmp.lt.s32.totalorder %v3062_v54, 1 }
 0x16b   : > { %v1989_v48 = vor.u32 %v2496_v36, %v1986_v44  ;;  %v2170_v44 = vld [vmem:[%s3703_s4 + $0x158] sm:$0xf0] }
 0x16c   : > { %1104 = vmatpush.bf16.msrb.mxu0 %v2053_v15  ;;  %v763_v15 = vand.u32 31, %v3062_v54 }
 0x16d   : > { %1082 = vmatpush.bf16.msra.mxu3 %v2013_v53  ;;  %1044 = vmatpush.bf16.msrb.mxu1 %v2009_v55 }
 0x16e   : > { %vm3194_vm9 = vcmp.ne.s32.totalorder %v763_v15, 0 }
 0x16f   : > { %vm3334_vm13 = vmpackc.low %vm2580_vm12, %vm3194_vm9 }
 0x170   : > { %v528_v14 = vpop.f32.mrf.mxu1  ;;  %1333 = vmatpush.bf16.msra.mxu0 %v2253_v43  ;;  %v2474_v43 = vld [vmem:[%s3703_s4 + $0x154] sm:$0xf] }
 0x171   : > { %1083 = vmatpush.bf16.msra.mxu3 %v2005_v5  ;;  %1045 = vmatpush.bf16.msrb.mxu1 %v2001_v8  ;;  %v529_v41 = vadd.f32 %v528_v14, %v2853_v51  ;;  %v2240_v51 = vld [vmem:[%s3703_s4 + $0x1e0] sm:$0xf]  ;;  %v2479_v5 = vld [vmem:[%s3703_s4 + $0x174] sm:$0xf0] }
 0x172   : > { %v2241_v55 = vor.u32 %v2493_v50, %v2240_v51  ;;  %v2185_v8 = vor.u32 %v2479_v5, %v2184_v63  ;;  %v2217_v63 = vor.u32 %v2487_v57, %v2216_v56 }
 0x174   : > { %1296 = vmatpush.bf16.msrb.mxu2 %v2241_v55  ;;  %1334 = vmatpush.bf16.msra.mxu0 %v2245_v59  ;;  %v513_v55 = vadd.f32 %v2879_v0, %v2815_v29  ;;  %v2486_v59 = vld [vmem:[%s3703_s4 + $0x1b4] sm:$0xf]  ;;  %v2218_v29 = vld [vmem:[%s3703_s4 + $0x1b8] sm:$0xf0] }
 0x175   : > { %1084 = vmatpush.bf16.msra.mxu3 %v1997_v22  ;;  %1046 = vmatpush.bf16.msrb.mxu1 %v1993_v25  ;;  %v2477_v25 = vld [vmem:[%s3703_s4 + $0x164] sm:$0xf0]  ;;  %v2221_v5 = vor.u32 %v2486_v59, %v2218_v29 }
 0x178   : > { %v531_v6 = vpop.f32.mrf.mxu1 }
 0x179   : > { %1085 = vmatpush.bf16.msra.mxu3 %v1989_v48  ;;  %1047 = vmatpush.bf16.msrb.mxu1 %v1985_v49  ;;  %v532_v12 = vadd.f32 %v531_v6, %v2917_v20  ;;  %v2168_v48 = vld [vmem:[%s3703_s4 + $0x150] sm:$0xf]  ;;  %v2475_v49 = vld [vmem:[%s3703_s4 + $0x154] sm:$0xf0]  ;;  %v2472_v6 = vld [vmem:[%s3703_s4 + $0x144] sm:$0xf] }
 0x17d   : > { %1276 = vmatpush.bf16.msra.mxu1 %v2185_v8 }
 0x180   : > { %v533_v0 = vpop.f32.mrf.mxu1 }
 0x1d5   : > { %v661_v7 = vpop.f32.mrf.mxu0 }
 0x1d6   : > { %v672_v11 = vadd.f32 %v661_v7, %v527_v3  ;;  %v2189_v3 = vor.u32 %v2478_v60, %v2186_v62  ;;  %v510_v7 = vadd.f32 %v2827_v39, %v2813_v28  ;;  %v2233_v28 = vor.u32 %v2491_v10, %v2232_v9  ;;  %v2234_v39 = vld [vmem:[%s3703_s4 + $0x1d8] sm:$0xf0] }
 0x1d7   : > { %v2237_v16 = vor.u32 %v2490_v38, %v2234_v39  ;;  %v534_v9 = vadd.f32 %v533_v0, %v2984_v61  ;;  %v2160_v39 = vld [vmem:[%s3703_s4 + $0x140] sm:$0xf]  ;;  %v2473_v61 = vld [vmem:[%s3703_s4 + $0x144] sm:$0xf0] }
 0x1d8   : > { %v686_v21 = vadd.f32 %v2996_v4, %v672_v11  ;;  %1314 = vmatpush.bf16.msrb.mxu3 %v2189_v3  ;;  %1297 = vmatpush.bf16.msrb.mxu2 %v2233_v28  ;;  %v2161_v19 = vor.u32 %v2473_v61, %v2160_v39  ;;  %v2481_v61 = vld [vmem:[%s3703_s4 + $0x184] sm:$0xf0] }
 0x1d9   : > { %1335 = vmatpush.bf16.msra.mxu0 %v2237_v16 }
 0x1da   : > { %vm694_vm2 = vcmp.gt.f32.partialorder %v686_v21, 0.0  ;;  %v702_v37 = vmul.f32 0.2, %v686_v21 }
 0x1db   : > { %v642_v34 = vpop.f32.mrf.mxu3 }
 0x1dc   : > { %v671_v42 = vadd.f32 %v642_v34, %v508_v24  ;;  %v3071_v58 = vsel %vm694_vm2, %v686_v21, %v702_v37  ;;  %v2176_v24 = vld [vmem:[%s3703_s4 + $0x160] sm:$0xf]  ;;  %v2489_v37 = vld [vmem:[%s3703_s4 + $0x1c4] sm:$0xf0]  ;;  %v2488_v34 = vld [vmem:[%s3703_s4 + $0x1c4] sm:$0xf]  ;;  %1315 = vmatpush.bf16.msrb.mxu3 %v2181_v23 }
 0x1dd   : > { %v663_v47 = vpop.f32.mrf.mxu0  ;;  %v812_v13 = vrot.slane %v3071_v58, 7  ;;  %v1357_v27 = vrot.slane %v3071_v58, 1  ;;  %v2177_v18 = vor.u32 %v2477_v25, %v2176_v24  ;;  %v2484_v23 = vld [vmem:[%s3703_s4 + $0x1a4] sm:$0xf] }
 0x1de   : > { %v685_v52 = vadd.f32 %v3034_v31, %v671_v42  ;;  %v674_v53 = vadd.f32 %v663_v47, %v529_v41  ;;  %v2225_v41 = vor.u32 %v2489_v37, %v2224_v26  ;;  %v2226_v42 = vld [vmem:[%s3703_s4 + $0x1c8] sm:$0xf0]  ;;  %v2173_v47 = vor.u32 %v2474_v43, %v2170_v44 }
 0x1df   : > { %1277 = vmatpush.bf16.msra.mxu1 %v2177_v18  ;;  %v2229_v46 = vor.u32 %v2488_v34, %v2226_v42  ;;  %v2210_v18 = vld [vmem:[%s3703_s4 + $0x1a8] sm:$0xf0]  ;;  %v2470_v34 = vld [vmem:[%s3703_s4 + $0x134] sm:$0xf] }
 0x1e0   : > { %vm693_vm3 = vcmp.gt.f32.partialorder %v685_v52, 0.0  ;;  %v701_v1 = vmul.f32 0.2, %v685_v52  ;;  %v688_v2 = vadd.f32 %v2996_v4, %v674_v53  ;;  %1298 = vmatpush.bf16.msrb.mxu2 %v2225_v41  ;;  %v2169_v53 = vor.u32 %v2475_v49, %v2168_v48  ;;  %1316 = vmatpush.bf16.msrb.mxu3 %v2173_v47  ;;  %v2471_v47 = vld [vmem:[%s3703_s4 + $0x134] sm:$0xf0] }
 0x1e1   : > { %1336 = vmatpush.bf16.msra.mxu0 %v2229_v46  ;;  %v2213_v37 = vor.u32 %v2484_v23, %v2210_v18  ;;  %v2200_v49 = vld [vmem:[%s3703_s4 + $0x190] sm:$0xf]  ;;  %v2138_v23 = vld [vmem:[%s3703_s4 + $0x118] sm:$0xf0] }
 0x1e2   : > { %vm696_vm4 = vcmp.gt.f32.partialorder %v688_v2, 0.0  ;;  %v704_v11 = vmul.f32 0.2, %v688_v2  ;;  %v3111_v21 = vsel %vm693_vm3, %v685_v52, %v701_v1 }
 0x1e3   : > { %v644_v14 = vpop.f32.mrf.mxu3  ;;  %v811_v45 = vrot.slane %v3111_v21, 7  ;;  %1278 = vmatpush.bf16.msra.mxu1 %v2169_v53 }
 0x1e4   : > { %v3114_v20 = vsel %vm696_vm4, %v688_v2, %v704_v11  ;;  %v673_v22 = vadd.f32 %v644_v14, %v510_v7  ;;  %v2162_v7 = vld [vmem:[%s3703_s4 + $0x148] sm:$0xf0]  ;;  %1299 = vmatpush.bf16.msrb.mxu2 %v2217_v63  ;;  %v1356_v14 = vrot.slane %v3111_v21, 1 }
 0x1e5   : > { %v1359_v32 = vrot.slane %v3114_v20, 1  ;;  %v666_v33 = vpop.f32.mrf.mxu0  ;;  %v2165_v28 = vor.u32 %v2472_v6, %v2162_v7  ;;  %v814_v24 = vrot.slane %v3114_v20, 7  ;;  %1337 = vmatpush.bf16.msra.mxu0 %v2221_v5  ;;  %v2146_v63 = vld [vmem:[%s3703_s4 + $0x128] sm:$0xf0]  ;;  %v2144_v5 = vld [vmem:[%s3703_s4 + $0x120] sm:$0xf] }
 0x1e6   : > { %v687_v35 = vadd.f32 %v3034_v31, %v673_v22  ;;  %v676_v36 = vadd.f32 %v666_v33, %v532_v12  ;;  %v2208_v12 = vld [vmem:[%s3703_s4 + $0x1a0] sm:$0xf]  ;;  %v2485_v22 = vld [vmem:[%s3703_s4 + $0x1a4] sm:$0xf0] }
 0x1e7   : > { %v3157_v51 = vsel %vm1364_vm5, %v1357_v27, %v1359_v32  ;;  %1317 = vmatpush.bf16.msrb.mxu3 %v2165_v28  ;;  %v2209_v33 = vor.u32 %v2485_v22, %v2208_v12  ;;  %1279 = vmatpush.bf16.msra.mxu1 %v2161_v19  ;;  %v2469_v6 = vld [vmem:[%s3703_s4 + $0x124] sm:$0xf0]  ;;  %v2192_v7 = vld [vmem:[%s3703_s4 + $0x180] sm:$0xf]  ;;  %v2480_v12 = vld [vmem:[%s3703_s4 + $0x184] sm:$0xf] }
 0x1e8   : > { %vm695_vm7 = vcmp.gt.f32.partialorder %v687_v35, 0.0  ;;  %v703_v50 = vmul.f32 0.2, %v687_v35  ;;  %v690_v52 = vadd.f32 %v2996_v4, %v676_v36  ;;  %v2152_v36 = vld [vmem:[%s3703_s4 + $0x130] sm:$0xf]  ;;  %v2145_v39 = vor.u32 %v2469_v6, %v2144_v5 }
 0x1e9   : > { %1300 = vmatpush.bf16.msrb.mxu2 %v2209_v33  ;;  %v2153_v48 = vor.u32 %v2471_v47, %v2152_v36  ;;  %1338 = vmatpush.bf16.msra.mxu0 %v2213_v37  ;;  %v2193_v19 = vor.u32 %v2481_v61, %v2192_v7  ;;  %v2194_v22 = vld [vmem:[%s3703_s4 + $0x188] sm:$0xf0]  ;;  %v2136_v37 = vld [vmem:[%s3703_s4 + $0x110] sm:$0xf] }
 0x1ea   : > { %v3171_v60 = vsel %vm695_vm7, %v687_v35, %v703_v50  ;;  %vm698_vm8 = vcmp.gt.f32.partialorder %v690_v52, 0.0  ;;  %v706_v62 = vmul.f32 0.2, %v690_v52  ;;  %v2154_v35 = vld [vmem:[%s3703_s4 + $0x138] sm:$0xf0]  ;;  %v2197_v33 = vor.u32 %v2480_v12, %v2194_v22 }
 0x1eb   : > { %v813_v1 = vrot.slane %v3171_v60, 7  ;;  %v1358_v2 = vrot.slane %v3171_v60, 1  ;;  %v647_v3 = vpop.f32.mrf.mxu3  ;;  %v3186_v8 = vpack.c.bf16 %v3171_v60, %v3111_v21  ;;  %v2157_v46 = vor.u32 %v2470_v34, %v2154_v35  ;;  %v2483_v50 = vld [vmem:[%s3703_s4 + $0x194] sm:$0xf0]  ;;  %1280 = vmatpush.bf16.msra.mxu1 %v2153_v48 }
 0x1ec   : > { %v3190_v10 = vsel %vm698_vm8, %v690_v52, %v706_v62  ;;  %v675_v38 = vadd.f32 %v647_v3, %v513_v55  ;;  %v2202_v55 = vld [vmem:[%s3703_s4 + $0x198] sm:$0xf0]  ;;  %v2467_v34 = vld [vmem:[%s3703_s4 + $0x114] sm:$0xf0] }
 0x1ed   : > { %v1361_v15 = vrot.slane %v3190_v10, 1  ;;  %v668_v16 = vpop.f32.mrf.mxu0  ;;  %v3215_v17 = vsel %vm819_vm6, %v811_v45, %v813_v1  ;;  %v3249_v42 = vsel %vm1364_vm5, %v1356_v14, %v1358_v2  ;;  %1318 = vmatpush.bf16.msrb.mxu3 %v2157_v46  ;;  %v816_v11 = vrot.slane %v3190_v10, 7 }
 0x1ee   : > { %v689_v25 = vadd.f32 %v3034_v31, %v675_v38  ;;  %v678_v26 = vadd.f32 %v668_v16, %v534_v9  ;;  %v2137_v36 = vor.u32 %v2467_v34, %v2136_v37  ;;  %v2541_v37 = vld [vmem:[%s3703_s4 + $0x264] sm:$0xf0] }
 0x1ef   : > { %v1368_v41 = vsel %vm1364_vm5, %v1359_v32, %v1361_v15  ;;  %v515_v32 = vadd.f32 %v2943_v40, %v2817_v30  ;;  %v2201_v40 = vor.u32 %v2483_v50, %v2200_v49  ;;  %1281 = vmatpush.bf16.msra.mxu1 %v2145_v39 }
 0x1f0   : > { %vm697_vm10 = vcmp.gt.f32.partialorder %v689_v25, 0.0  ;;  %v705_v43 = vmul.f32 0.2, %v689_v25  ;;  %v692_v44 = vadd.f32 %v2996_v4, %v678_v26  ;;  %v2482_v4 = vld [vmem:[%s3703_s4 + $0x194] sm:$0xf]  ;;  %v3267_v52 = vpack.c.bf16 %v1368_v41, %v3157_v51 }
 0x1f1   : > { %v2205_v62 = vor.u32 %v2482_v4, %v2202_v55  ;;  %v2468_v51 = vld [vmem:[%s3703_s4 + $0x124] sm:$0xf]  ;;  %1301 = vmatpush.bf16.msrb.mxu2 %v2201_v40  ;;  %v2408_v41 = vld [vmem:[%s3703_s4 + $0x2f0] sm:$0xf]  ;;  %v2128_v55 = vld [vmem:[%s3703_s4 + $0x100] sm:$0xf] }
 0x1f2   : > { %v3269_v53 = vsel %vm697_vm10, %v689_v25, %v705_v43  ;;  %vm700_vm11 = vcmp.gt.f32.partialorder %v692_v44, 0.0  ;;  %v708_v30 = vmul.f32 0.2, %v692_v44  ;;  %v2149_v3 = vor.u32 %v2468_v51, %v2146_v63  ;;  %v2559_v43 = vld [vmem:[%s3703_s4 + $0x2f4] sm:$0xf0] }
 0x1f3   : > { %v1360_v56 = vrot.slane %v3269_v53, 1  ;;  %v649_v57 = vpop.f32.mrf.mxu3  ;;  %v815_v59 = vrot.slane %v3269_v53, 7  ;;  %1339 = vmatpush.bf16.msra.mxu0 %v2205_v62  ;;  %v2409_v60 = vor.u32 %v2559_v43, %v2408_v41  ;;  %1282 = vmatpush.bf16.msra.mxu1 %v2137_v36  ;;  %v2557_v51 = vld [vmem:[%s3703_s4 + $0x2e4] sm:$0xf0]  ;;  %v2556_v63 = vld [vmem:[%s3703_s4 + $0x2e4] sm:$0xf] }
 0x1f4   : > { %v3282_v29 = vsel %vm700_vm11, %v692_v44, %v708_v30  ;;  %v677_v0 = vadd.f32 %v649_v57, %v515_v32  ;;  %1319 = vmatpush.bf16.msrb.mxu3 %v2149_v3  ;;  %v2558_v44 = vld [vmem:[%s3703_s4 + $0x2f4] sm:$0xf]  ;;  %v2465_v57 = vld [vmem:[%s3703_s4 + $0x104] sm:$0xf0]  ;;  %v2552_v41 = vld [vmem:[%s3703_s4 + $0x2c4] sm:$0xf] }
 0x1f5   : > { %v818_v9 = vrot.slane %v3282_v29, 7  ;;  %v1363_v38 = vrot.slane %v3282_v29, 1  ;;  %v3301_v28 = vsel %vm819_vm6, %v813_v1, %v815_v59  ;;  %v2466_v1 = vld [vmem:[%s3703_s4 + $0x114] sm:$0xf]  ;;  %1302 = vmatpush.bf16.msrb.mxu2 %v2193_v19  ;;  %v1367_v46 = vsel %vm1364_vm5, %v1358_v2, %v1360_v56  ;;  %v2410_v2 = vld [vmem:[%s3703_s4 + $0x2f8] sm:$0xf0] }
 0x1f6   : > { %v691_v16 = vadd.f32 %v3034_v31, %v677_v0  ;;  %v825_v31 = vsel %vm819_vm6, %v812_v13, %v814_v24  ;;  %v2141_v18 = vor.u32 %v2466_v1, %v2138_v23  ;;  %v3382_v49 = vpack.c.bf16 %v1367_v46, %v3249_v42  ;;  %v2400_v42 = vld [vmem:[%s3703_s4 + $0x2e0] sm:$0xf]  ;;  %v2555_v19 = vld [vmem:[%s3703_s4 + $0x2d4] sm:$0xf0]  ;;  %v2554_v23 = vld [vmem:[%s3703_s4 + $0x2d4] sm:$0xf] }
 0x1f7   : > { %v827_v25 = vsel %vm819_vm6, %v818_v9, %v812_v13  ;;  %v1366_v47 = vsel %vm1364_vm5, %v1361_v15, %v1363_v38  ;;  %v1372_v32 = vsel %vm1364_vm5, %v1363_v38, %v1357_v27  ;;  %v2464_v15 = vld [vmem:[%s3703_s4 + $0x104] sm:$0xf]  ;;  %v2130_v27 = vld [vmem:[%s3703_s4 + $0x108] sm:$0xf0]  ;;  %1340 = vmatpush.bf16.msra.mxu0 %v2197_v33  ;;  %v2413_v30 = vor.u32 %v2558_v44, %v2410_v2  ;;  %v2553_v36 = vld [vmem:[%s3703_s4 + $0x2c4] sm:$0xf0] }
 0x1f8   : > { %vm699_vm14 = vcmp.gt.f32.partialorder %v691_v16, 0.0  ;;  %v707_v13 = vmul.f32 0.2, %v691_v16  ;;  %v2116_v35 = vpack.c.bf16 %v825_v31, %v827_v25  ;;  %1320 = vmatpush.bf16.msrb.mxu3 %v2141_v18  ;;  %v2133_v40 = vor.u32 %v2464_v15, %v2130_v27  ;;  %v2402_v38 = vld [vmem:[%s3703_s4 + $0x2e8] sm:$0xf0] }
 0x1f9   : > { %v2129_v62 = vor.u32 %v2465_v57, %v2128_v55  ;;  %v3402_v3 = vpack.c.bf16 %v1372_v32, %v1366_v47  ;;  %v2401_v7 = vor.u32 %v2557_v51, %v2400_v42  ;;  %v2405_v12 = vor.u32 %v2556_v63, %v2402_v38  ;;  %v2394_v31 = vld [vmem:[%s3703_s4 + $0x2d8] sm:$0xf0]  ;;  %v2540_v25 = vld [vmem:[%s3703_s4 + $0x264] sm:$0xf]  ;;  %v2338_v33 = vld [vmem:[%s3703_s4 + $0x268] sm:$0xf0] }
 0x1fa   : > { %v715_v48 = vsel %vm699_vm14, %v691_v16, %v707_v13  ;;  %2117 = vmatmul.msk.bf16.vlgmr.msra.gmra.mxu2 %vm3334_vm13, %v2116_v35  ;;  %2125 = vmatmul.msk.bf16.vlgmr.msrb.gmra.mxu0 %vm3334_vm13, %v2116_v35  ;;  %v2542_v16 = vld [vmem:[%s3703_s4 + $0x274] sm:$0xf]  ;;  %v2397_v26 = vor.u32 %v2554_v23, %v2394_v31  ;;  %v2336_v18 = vld [vmem:[%s3703_s4 + $0x260] sm:$0xf]  ;;  %v2341_v34 = vor.u32 %v2540_v25, %v2338_v33  ;;  %v2386_v43 = vld [vmem:[%s3703_s4 + $0x2c8] sm:$0xf0] }
 0x1fb   : > { %v817_v50 = vrot.slane %v715_v48, 7  ;;  %v1362_v4 = vrot.slane %v715_v48, 1  ;;  %1605 = vmatpush.bf16.msra.mxu2 %v2409_v60  ;;  %v3400_v0 = vpack.c.bf16 %v715_v48, %v3269_v53  ;;  %1643 = vmatpush.bf16.msrb.mxu0 %v2413_v30  ;;  %v2346_v53 = vld [vmem:[%s3703_s4 + $0x278] sm:$0xf0]  ;;  %v2337_v13 = vor.u32 %v2541_v37, %v2336_v18  ;;  %v2384_v35 = vld [vmem:[%s3703_s4 + $0x2c0] sm:$0xf] }
 0x1fc   : > { %1321 = vmatpush.bf16.msrb.mxu3 %v2133_v40  ;;  %v2349_v21 = vor.u32 %v2542_v16, %v2346_v53  ;;  %1283 = vmatpush.bf16.msra.mxu1 %v2129_v62  ;;  %v2538_v44 = vld [vmem:[%s3703_s4 + $0x254] sm:$0xf]  ;;  %v2330_v46 = vld [vmem:[%s3703_s4 + $0x258] sm:$0xf0]  ;;  %v821_v47 = vsel %vm819_vm6, %v816_v11, %v818_v9  ;;  %v2385_v32 = vor.u32 %v2553_v36, %v2384_v35  ;;  %v2328_v48 = vld [vmem:[%s3703_s4 + $0x250] sm:$0xf] }
 0x1fd   : > { %v826_v5 = vsel %vm819_vm6, %v817_v50, %v811_v45  ;;  %v820_v6 = vsel %vm819_vm6, %v815_v59, %v817_v50  ;;  %v1365_v39 = vsel %vm1364_vm5, %v1360_v56, %v1362_v4  ;;  %v1371_v59 = vsel %vm1364_vm5, %v1362_v4, %v1356_v14  ;;  %v2543_v14 = vld [vmem:[%s3703_s4 + $0x274] sm:$0xf0]  ;;  %v2376_v4 = vld [vmem:[%s3703_s4 + $0x2b0] sm:$0xf]  ;;  %v2550_v40 = vld [vmem:[%s3703_s4 + $0x2b4] sm:$0xf] }
 0x1fe   : > { %v2112_v61 = vpack.c.bf16 %v3215_v17, %v826_v5  ;;  %v3421_v45 = vpack.c.bf16 %v820_v6, %v3301_v28  ;;  %v2344_v17 = vld [vmem:[%s3703_s4 + $0x270] sm:$0xf]  ;;  %v3436_v56 = vpack.c.bf16 %v1371_v59, %v1365_v39  ;;  %v2539_v60 = vld [vmem:[%s3703_s4 + $0x254] sm:$0xf0]  ;;  %v823_v2 = vsel %vm819_vm6, %v814_v24, %v816_v11  ;;  %v2378_v11 = vld [vmem:[%s3703_s4 + $0x2b8] sm:$0xf0] }
 0x1ff   : > { %v2392_v28 = vld [vmem:[%s3703_s4 + $0x2d0] sm:$0xf]  ;;  %1606 = vmatpush.bf16.msra.mxu2 %v2401_v7  ;;  %v2345_v22 = vor.u32 %v2543_v14, %v2344_v17  ;;  %1644 = vmatpush.bf16.msrb.mxu0 %v2405_v12  ;;  %v2389_v9 = vor.u32 %v2552_v41, %v2386_v43  ;;  %v2333_v15 = vor.u32 %v2538_v44, %v2330_v46  ;;  %v2551_v30 = vld [vmem:[%s3703_s4 + $0x2b4] sm:$0xf0]  ;;  %v2536_v55 = vld [vmem:[%s3703_s4 + $0x244] sm:$0xf] }
 0x200   : > { %2113 = vmatmul.msk.bf16.vlgmr.msrb.gmra.mxu1 %vm3334_vm13, %v2112_v61  ;;  %2121 = vmatmul.msk.bf16.vlgmr.msra.gmra.mxu3 %vm3334_vm13, %v2112_v61  ;;  %v2393_v1 = vor.u32 %v2555_v19, %v2392_v28  ;;  %v847_v27 = vpack.c.bf16 %v821_v47, %v823_v2  ;;  %v2329_v50 = vor.u32 %v2539_v60, %v2328_v48  ;;  %v2322_v57 = vld [vmem:[%s3703_s4 + $0x248] sm:$0xf0]  ;;  %v2320_v51 = vld [vmem:[%s3703_s4 + $0x240] sm:$0xf]  ;;  %v2537_v63 = vld [vmem:[%s3703_s4 + $0x244] sm:$0xf0] }
 0x201   : > { %1624 = vmatpush.bf16.msra.mxu3 %v2349_v21  ;;  %1586 = vmatpush.bf16.msrb.mxu1 %v2345_v22  ;;  %v2377_v24 = vor.u32 %v2551_v30, %v2376_v4  ;;  %v2381_v62 = vor.u32 %v2550_v40, %v2378_v11  ;;  %v2325_v42 = vor.u32 %v2536_v55, %v2322_v57  ;;  %v2368_v5 = vld [vmem:[%s3703_s4 + $0x2a0] sm:$0xf]  ;;  %v2549_v6 = vld [vmem:[%s3703_s4 + $0x2a4] sm:$0xf0]  ;;  %v2548_v7 = vld [vmem:[%s3703_s4 + $0x2a4] sm:$0xf] }
 0x202   : > { %v2370_v38 = vld [vmem:[%s3703_s4 + $0x2a8] sm:$0xf0]  ;;  %v2321_v39 = vor.u32 %v2537_v63, %v2320_v51  ;;  %v2369_v61 = vor.u32 %v2549_v6, %v2368_v5  ;;  %v2534_v59 = vld [vmem:[%s3703_s4 + $0x234] sm:$0xf]  ;;  %v2314_v16 = vld [vmem:[%s3703_s4 + $0x238] sm:$0xf0]  ;;  %v723_v60 = vpack.c.bf16 %v3114_v20, %v3071_v58  ;;  %v725_v4 = vpack.c.bf16 %v3282_v29, %v3190_v10 }
 0x203   : > { %1607 = vmatpush.bf16.msra.mxu2 %v2393_v1  ;;  %1645 = vmatpush.bf16.msrb.mxu0 %v2397_v26  ;;  %v2373_v12 = vor.u32 %v2548_v7, %v2370_v38  ;;  %v2312_v53 = vld [vmem:[%s3703_s4 + $0x230] sm:$0xf]  ;;  %v2317_v17 = vor.u32 %v2534_v59, %v2314_v16  ;;  %v2535_v21 = vld [vmem:[%s3703_s4 + $0x234] sm:$0xf0]  ;;  %v2362_v1 = vld [vmem:[%s3703_s4 + $0x298] sm:$0xf0] }
 0x204   : > { %v2360_v14 = vld [vmem:[%s3703_s4 + $0x290] sm:$0xf]  ;;  %v2547_v28 = vld [vmem:[%s3703_s4 + $0x294] sm:$0xf0]  ;;  %v2313_v19 = vor.u32 %v2535_v21, %v2312_v53  ;;  %v2532_v23 = vld [vmem:[%s3703_s4 + $0x224] sm:$0xf] }
 0x205   : > { %1625 = vmatpush.bf16.msra.mxu3 %v2341_v34  ;;  %1587 = vmatpush.bf16.msrb.mxu1 %v2337_v13  ;;  %v2361_v22 = vor.u32 %v2547_v28, %v2360_v14  ;;  %v2306_v31 = vld [vmem:[%s3703_s4 + $0x228] sm:$0xf0]  ;;  %v2304_v25 = vld [vmem:[%s3703_s4 + $0x220] sm:$0xf]  ;;  %v2533_v26 = vld [vmem:[%s3703_s4 + $0x224] sm:$0xf0] }
 0x206   : > { %v2309_v18 = vor.u32 %v2532_v23, %v2306_v31  ;;  %v2352_v37 = vld [vmem:[%s3703_s4 + $0x280] sm:$0xf]  ;;  %v2545_v34 = vld [vmem:[%s3703_s4 + $0x284] sm:$0xf0]  ;;  %v2544_v13 = vld [vmem:[%s3703_s4 + $0x284] sm:$0xf]  ;;  %v2305_v43 = vor.u32 %v2533_v26, %v2304_v25 }
 0x207   : > { %1608 = vmatpush.bf16.msra.mxu2 %v2385_v32  ;;  %1646 = vmatpush.bf16.msrb.mxu0 %v2389_v9  ;;  %v2354_v35 = vld [vmem:[%s3703_s4 + $0x288] sm:$0xf0]  ;;  %v2530_v36 = vld [vmem:[%s3703_s4 + $0x214] sm:$0xf]  ;;  %v2298_v41 = vld [vmem:[%s3703_s4 + $0x218] sm:$0xf0]  ;;  %v2353_v44 = vor.u32 %v2545_v34, %v2352_v37 }
 0x208   : > { %v2296_v46 = vld [vmem:[%s3703_s4 + $0x210] sm:$0xf]  ;;  %v2531_v47 = vld [vmem:[%s3703_s4 + $0x214] sm:$0xf0]  ;;  %v2357_v32 = vor.u32 %v2544_v13, %v2354_v35  ;;  %v2301_v48 = vor.u32 %v2530_v36, %v2298_v41  ;;  %v2528_v9 = vld [vmem:[%s3703_s4 + $0x204] sm:$0xf] }
 0x209   : > { %1626 = vmatpush.bf16.msra.mxu3 %v2333_v15  ;;  %1588 = vmatpush.bf16.msrb.mxu1 %v2329_v50  ;;  %v2297_v2 = vor.u32 %v2531_v47, %v2296_v46  ;;  %v2290_v15 = vld [vmem:[%s3703_s4 + $0x208] sm:$0xf0]  ;;  %v2529_v20 = vld [vmem:[%s3703_s4 + $0x204] sm:$0xf0]  ;;  %v721_v30 = vadd.s32 24, %v3062_v54 }
 0x20a   : > { %1072 = vmatmul.bf16.gmra.mxu2 %v847_v27  ;;  %1110 = vmatmul.bf16.gmra.mxu0 %v847_v27  ;;  %v2288_v27 = vld [vmem:[%s3703_s4 + $0x200] sm:$0xf]  ;;  %v2293_v58 = vor.u32 %v2528_v9, %v2290_v15 }
 0x20b   : > { %1609 = vmatpush.bf16.msra.mxu2 %v2377_v24  ;;  %1647 = vmatpush.bf16.msrb.mxu0 %v2381_v62  ;;  %v2289_v50 = vor.u32 %v2529_v20, %v2288_v27 }
 0x20d   : > { %1627 = vmatpush.bf16.msra.mxu3 %v2325_v42  ;;  %1589 = vmatpush.bf16.msrb.mxu1 %v2321_v39 }
 0x20f   : > { %1610 = vmatpush.bf16.msra.mxu2 %v2369_v61  ;;  %1648 = vmatpush.bf16.msrb.mxu0 %v2373_v12 }
 0x210   : > { %1053 = vmatmul.bf16.gmra.mxu1 %v3421_v45  ;;  %1091 = vmatmul.bf16.gmra.mxu3 %v3421_v45  ;;  %v2546_v45 = vld [vmem:[%s3703_s4 + $0x294] sm:$0xf] }
 0x211   : > { %1628 = vmatpush.bf16.msra.mxu3 %v2317_v17  ;;  %v2365_v33 = vor.u32 %v2546_v45, %v2362_v1  ;;  %1590 = vmatpush.bf16.msrb.mxu1 %v2313_v19  ;;  %v1670_v1 = vld [vmem:[%s3704_s5] sm:$0x3] }
 0x212   : > { %v3660_v37 = vperm.slane %v1670_v1, 0 }
 0x213   : > { %1611 = vmatpush.bf16.msra.mxu2 %v2361_v22  ;;  %1649 = vmatpush.bf16.msrb.mxu0 %v2365_v33 }
 0x215   : > { %1629 = vmatpush.bf16.msra.mxu3 %v2309_v18  ;;  %1591 = vmatpush.bf16.msrb.mxu1 %v2305_v43 }
 0x217   : > { %1612 = vmatpush.bf16.msra.mxu2 %v2353_v44  ;;  %1650 = vmatpush.bf16.msrb.mxu0 %v2357_v32  ;;  %v3668_v32 = vperm.slane %v1670_v1, 1 }
 0x219   : > { %1630 = vmatpush.bf16.msra.mxu3 %v2301_v48  ;;  %1592 = vmatpush.bf16.msrb.mxu1 %v2297_v2 }
 0x21a   : > { %1303 = vmatmul.bf16.vlgmr.msrb.gmra.mxu2 %v723_v60  ;;  %1341 = vmatmul.bf16.vlgmr.msra.gmra.mxu0 %v723_v60 }
 0x21d   : > { %1631 = vmatpush.bf16.msra.mxu3 %v2293_v58  ;;  %1593 = vmatpush.bf16.msrb.mxu1 %v2289_v50 }
 0x220   : > { %1284 = vmatmul.bf16.vlgmr.msra.gmra.mxu1 %v3186_v8  ;;  %1322 = vmatmul.bf16.vlgmr.msrb.gmra.mxu3 %v3186_v8  ;;  %v784_v8 = vand.u32 31, %v721_v30 }
 0x222   : > { %vm2561_vm15 = vcmp.ne.s32.totalorder %v784_v8, 31 }
 0x223   : > { %vm2415_vm0 = vmpackc.low %vm2561_vm15, %vm2580_vm12 }
 0x22a   : > { %1308 = vmatmul.bf16.gmra.mxu2 %v725_v4  ;;  %1346 = vmatmul.bf16.gmra.mxu0 %v725_v4 }
 0x230   : > { %1289 = vmatmul.bf16.gmra.mxu1 %v3400_v0  ;;  %1327 = vmatmul.bf16.gmra.mxu3 %v3400_v0 }
 0x23a   : > { %1613 = vmatmul.bf16.vlgmr.msra.gmra.mxu2 %v3267_v52  ;;  %1651 = vmatmul.bf16.vlgmr.msrb.gmra.mxu0 %v3267_v52 }
 0x240   : > { %1594 = vmatmul.bf16.vlgmr.msrb.gmra.mxu1 %v3382_v49  ;;  %1632 = vmatmul.bf16.vlgmr.msra.gmra.mxu3 %v3382_v49 }
 0x24a   : > { %2421 = vmatmul.msk.bf16.gmra.mxu2 %vm2415_vm0, %v3402_v3  ;;  %2429 = vmatmul.msk.bf16.gmra.mxu0 %vm2415_vm0, %v3402_v3 }
 0x250   : > { %2417 = vmatmul.msk.bf16.gmra.mxu1 %vm2415_vm0, %v3436_v56  ;;  %2425 = vmatmul.msk.bf16.gmra.mxu3 %vm2415_vm0, %v3436_v56 }
 0x277   : > { %v1106_v10 = vpop.f32.mrf.mxu0 }
 0x27d   : > { %v1049_v52 = vpop.f32.mrf.mxu1  ;;  %v1068_v29 = vpop.f32.mrf.mxu2 }
 0x27e   : > { %v1069_v19 = vadd.f32 %v1068_v29, %v1049_v52 }
 0x27f   : > { %v1108_v54 = vpop.f32.mrf.mxu0 }
 0x283   : > { %v1087_v0 = vpop.f32.mrf.mxu3 }
 0x284   : > { %v1107_v31 = vadd.f32 %v1106_v10, %v1087_v0 }
 0x285   : > { %v1051_v40 = vpop.f32.mrf.mxu1  ;;  %v1070_v24 = vpop.f32.mrf.mxu2 }
 0x286   : > { %v1071_v13 = vadd.f32 %v1070_v24, %v1051_v40 }
 0x287   : > { %v3633_v49 = vpop.f32.mrf.mxu0 }
 0x28b   : > { %v1089_v11 = vpop.f32.mrf.mxu3 }
 0x28c   : > { %v1109_v48 = vadd.f32 %v1108_v54, %v1089_v11 }
 0x28d   : > { %v1054_v55 = vpop.f32.mrf.mxu1  ;;  %v1073_v57 = vpop.f32.mrf.mxu2 }
 0x28e   : > { %v1074_v4 = vadd.f32 %v1073_v57, %v1054_v55 }
 0x28f   : > { %v3635_v62 = vpop.f32.mrf.mxu0 }
 0x293   : > { %v3637_v42 = vpop.f32.mrf.mxu3 }
 0x295   : > { %v3639_v3 = vpop.f32.mrf.mxu1  ;;  %v3641_v51 = vpop.f32.mrf.mxu2 }
 0x297   : > { %v1342_v56 = vpop.f32.mrf.mxu0 }
 0x29b   : > { %v3643_v63 = vpop.f32.mrf.mxu3 }
 0x29d   : > { %v1285_v5 = vpop.f32.mrf.mxu1  ;;  %v1304_v6 = vpop.f32.mrf.mxu2 }
 0x29e   : > { %v1286_v22 = vadd.f32 %v1285_v5, %v1069_v19 }
 0x29f   : > { %v1344_v7 = vpop.f32.mrf.mxu0 }
 0x2a0   : > { %v1305_v33 = vadd.f32 %v1304_v6, %v1286_v22 }
 0x2a3   : > { %v1323_v38 = vpop.f32.mrf.mxu3 }
 0x2a4   : > { %v1324_v34 = vadd.f32 %v1323_v38, %v1107_v31 }
 0x2a5   : > { %v1287_v39 = vpop.f32.mrf.mxu1  ;;  %v1306_v61 = vpop.f32.mrf.mxu2 }
 0x2a6   : > { %v1288_v36 = vadd.f32 %v1287_v39, %v1071_v13  ;;  %v1343_v43 = vadd.f32 %v1342_v56, %v1324_v34  ;;  %v1112_v56 = vadd.f32 %v3633_v49, %v3637_v42 }
 0x2a7   : > { %v3645_v12 = vpop.f32.mrf.mxu0 }
 0x2a8   : > { %v1307_v9 = vadd.f32 %v1306_v61, %v1288_v36 }
 0x2ab   : > { %v1325_v59 = vpop.f32.mrf.mxu3 }
 0x2ac   : > { %v1326_v20 = vadd.f32 %v1325_v59, %v1109_v48 }
 0x2ad   : > { %v1290_v16 = vpop.f32.mrf.mxu1  ;;  %v1309_v53 = vpop.f32.mrf.mxu2 }
 0x2ae   : > { %v1291_v10 = vadd.f32 %v1290_v16, %v1074_v4  ;;  %v1345_v54 = vadd.f32 %v1344_v7, %v1326_v20  ;;  %v1076_v7 = vadd.f32 %v3641_v51, %v3639_v3  ;;  %v1114_v3 = vadd.f32 %v3635_v62, %v3643_v63 }
 0x2af   : > { %v3647_v17 = vpop.f32.mrf.mxu0 }
 0x2b0   : > { %v1310_v5 = vadd.f32 %v1309_v53, %v1291_v10 }
 0x2b3   : > { %v1328_v21 = vpop.f32.mrf.mxu3 }
 0x2b4   : > { %v1329_v61 = vadd.f32 %v1328_v21, %v1112_v56 }
 0x2b5   : > { %v3649_v14 = vpop.f32.mrf.mxu1  ;;  %v3651_v28 = vpop.f32.mrf.mxu2 }
 0x2b6   : > { %v1293_v22 = vadd.f32 %v3649_v14, %v1076_v7  ;;  %v1348_v53 = vadd.f32 %v3645_v12, %v1329_v61 }
 0x2b7   : > { %v1652_v23 = vpop.f32.mrf.mxu0 }
 0x2b8   : > { %v1312_v14 = vadd.f32 %v3651_v28, %v1293_v22 }
 0x2bb   : > { %v3655_v45 = vpop.f32.mrf.mxu3 }
 0x2bc   : > { %v1331_v34 = vadd.f32 %v3655_v45, %v1114_v3 }
 0x2bd   : > { %v1595_v25 = vpop.f32.mrf.mxu1  ;;  %v1614_v26 = vpop.f32.mrf.mxu2 }
 0x2be   : > { %v1615_v18 = vadd.f32 %v1614_v26, %v1595_v25  ;;  %v1350_v63 = vadd.f32 %v3647_v17, %v1331_v34 }
 0x2bf   : > { %v1654_v50 = vpop.f32.mrf.mxu0 }
 0x2c0   : > { %v1662_v35 = vadd.f32 %v1615_v18, %v1305_v33 }
 0x2c2   : > { %v1676_v41 = vadd.f32 %v3660_v37, %v1662_v35 }
 0x2c3   : > { %v1633_v44 = vpop.f32.mrf.mxu3 }
 0x2c4   : > { %vm1684_vm1 = vcmp.gt.f32.partialorder %v1676_v41, 0.0  ;;  %v1692_v46 = vmul.f32 0.2, %v1676_v41  ;;  %v1653_v47 = vadd.f32 %v1652_v23, %v1633_v44 }
 0x2c5   : > { %v1597_v60 = vpop.f32.mrf.mxu1  ;;  %v1616_v2 = vpop.f32.mrf.mxu2 }
 0x2c6   : > { %v1700_v15 = vsel %vm1684_vm1, %v1676_v41, %v1692_v46  ;;  %v1663_v27 = vadd.f32 %v1653_v47, %v1343_v43  ;;  %v1617_v58 = vadd.f32 %v1616_v2, %v1597_v60 }
 0x2c7   : > { %1708 = vst [vmem:[%s3666_s19] sm:$0xff] %v1700_v15  ;;  %v1657_v19 = vpop.f32.mrf.mxu0 }
 0x2c8   : > { %v1677_v30 = vadd.f32 %v3668_v32, %v1663_v27  ;;  %v1664_v8 = vadd.f32 %v1617_v58, %v1307_v9 }
 0x2ca   : > { %vm1685_vm2 = vcmp.gt.f32.partialorder %v1677_v30, 0.0  ;;  %v1693_v52 = vmul.f32 0.2, %v1677_v30  ;;  %v1678_v29 = vadd.f32 %v3660_v37, %v1664_v8 }
 0x2cb   : > { %v1635_v0 = vpop.f32.mrf.mxu3 }
 0x2cc   : > { %v1701_v40 = vsel %vm1685_vm2, %v1677_v30, %v1693_v52  ;;  %vm1686_vm3 = vcmp.gt.f32.partialorder %v1678_v29, 0.0  ;;  %v1694_v24 = vmul.f32 0.2, %v1678_v29  ;;  %v1655_v11 = vadd.f32 %v1654_v50, %v1635_v0 }
 0x2cd   : > { %1709 = vst [vmem:[%s3666_s19 + $0x8] sm:$0xff] %v1701_v40  ;;  %v1600_v55 = vpop.f32.mrf.mxu1  ;;  %v1619_v57 = vpop.f32.mrf.mxu2 }
 0x2ce   : > { %v1702_v6 = vsel %vm1686_vm3, %v1678_v29, %v1694_v24  ;;  %v1665_v38 = vadd.f32 %v1655_v11, %v1345_v54  ;;  %v1620_v39 = vadd.f32 %v1619_v57, %v1600_v55 }
 0x2cf   : > { %1710 = vst [vmem:[%s3666_s19 + $0x10] sm:$0xff] %v1702_v6  ;;  %v1659_v36 = vpop.f32.mrf.mxu0 }
 0x2d0   : > { %v1679_v59 = vadd.f32 %v3668_v32, %v1665_v38  ;;  %v1666_v16 = vadd.f32 %v1620_v39, %v1310_v5 }
 0x2d2   : > { %vm1687_vm4 = vcmp.gt.f32.partialorder %v1679_v59, 0.0  ;;  %v1695_v49 = vmul.f32 0.2, %v1679_v59  ;;  %v1680_v42 = vadd.f32 %v3660_v37, %v1666_v16 }
 0x2d3   : > { %v1638_v1 = vpop.f32.mrf.mxu3 }
 0x2d4   : > { %v1703_v21 = vsel %vm1687_vm4, %v1679_v59, %v1695_v49  ;;  %vm1688_vm5 = vcmp.gt.f32.partialorder %v1680_v42, 0.0  ;;  %v1696_v23 = vmul.f32 0.2, %v1680_v42  ;;  %v1658_v31 = vadd.f32 %v1657_v19, %v1638_v1 }
 0x2d5   : > { %1711 = vst [vmem:[%s3666_s19 + $0x18] sm:$0xff] %v1703_v21  ;;  %v1602_v51 = vpop.f32.mrf.mxu1  ;;  %v1621_v25 = vpop.f32.mrf.mxu2 }
 0x2d6   : > { %v1704_v26 = vsel %vm1688_vm5, %v1680_v42, %v1696_v23  ;;  %v1667_v33 = vadd.f32 %v1658_v31, %v1348_v53  ;;  %v1622_v18 = vadd.f32 %v1621_v25, %v1602_v51 }
 0x2d7   : > { %1712 = vst [vmem:[%s3666_s19 + $0x20] sm:$0xff] %v1704_v26 }
 0x2d8   : > { %v1681_v12 = vadd.f32 %v3668_v32, %v1667_v33  ;;  %v1668_v13 = vadd.f32 %v1622_v18, %v1312_v14 }
 0x2da   : > { %vm1689_vm6 = vcmp.gt.f32.partialorder %v1681_v12, 0.0  ;;  %v1697_v35 = vmul.f32 0.2, %v1681_v12  ;;  %v1682_v62 = vadd.f32 %v3660_v37, %v1668_v13 }
 0x2db   : > { %v1640_v28 = vpop.f32.mrf.mxu3 }
 0x2dc   : > { %v1705_v41 = vsel %vm1689_vm6, %v1681_v12, %v1697_v35  ;;  %vm1690_vm7 = vcmp.gt.f32.partialorder %v1682_v62, 0.0  ;;  %v1698_v43 = vmul.f32 0.2, %v1682_v62  ;;  %v1660_v44 = vadd.f32 %v1659_v36, %v1640_v28 }
 0x2dd   : > { %1713 = vst [vmem:[%s3666_s19 + $0x28] sm:$0xff] %v1705_v41 }
 0x2de   : > { %v1706_v45 = vsel %vm1690_vm7, %v1682_v62, %v1698_v43  ;;  %v1669_v46 = vadd.f32 %v1660_v44, %v1350_v63 }
 0x2df   : > { %1714 = vst [vmem:[%s3666_s19 + $0x30] sm:$0xff] %v1706_v45 }
 0x2e0   : > { %v1683_v47 = vadd.f32 %v3668_v32, %v1669_v46 }
 0x2e2   : > { %vm1691_vm8 = vcmp.gt.f32.partialorder %v1683_v47, 0.0  ;;  %v1699_v48 = vmul.f32 0.2, %v1683_v47 }
 0x2e4   : > { %v1707_v60 = vsel %vm1691_vm8, %v1683_v47, %v1699_v48 }
 0x2e5   : > { %1715 = vst [vmem:[%s3666_s19 + $0x38] sm:$0xff] %v1707_v60 }
 0x2e6 PF: > { %s16_s21 = sadd.s32 1, %s2578_s21  }
 0x2e7   : > { %p13_p5 = scmp.ge.s32.totalorder %s16_s21, 4  }
 0x2e9   :  { %15 = sbr.rel (!%p13_p5) target bundleno = 1 (0x1), region = 80 }

</bundles_post_ra>
